<compile_context>
chip_gen: v7x
topology: tpu7x:2x2x1
jax: 0.10.0
libtpu: 0.0.40
codegen_flags: <defaults>
</compile_context>

<pallas_src>
import jax
import jax.numpy as jnp
from jax.experimental import pallas as pl
from jax.experimental.pallas import tpu as pltpu


def _round_up(x, m):
    return ((x + m - 1) // m) * m


def gru_kernel(emb_ref, wih_ref, whh_ref, bgx_ref, bhhn_ref, wo_ref, bo_ref,
               out_ref, gx_ref):
    T, Bp, Ep = emb_ref.shape
    Hp = whh_ref.shape[0]

    # (1) Input projection for every timestep as ONE MXU matmul (hoisted out of the
    #     recurrence). b_ih and the r/z parts of b_hh are already folded into bgx.
    x_all = emb_ref[...].reshape(T * Bp, Ep)
    gx_ref[...] = (
        jnp.dot(x_all, wih_ref[...], preferred_element_type=jnp.float32)
        + bgx_ref[...])

    # (2) Sequential GRU recurrence. Gate order [r | z | n]; each gate owns a
    #     128-lane-aligned slab of width Hp, so slicing is full-vreg work.
    def step(t, h):
        base = pl.multiple_of(t * Bp, Bp)
        gx = gx_ref[pl.ds(base, Bp), :]                       # (Bp, 3*Hp)
        gh = jnp.dot(h, whh_ref[...], preferred_element_type=jnp.float32)
        r = jax.nn.sigmoid(gx[:, 0:Hp] + gh[:, 0:Hp])
        z = jax.nn.sigmoid(gx[:, Hp:2 * Hp] + gh[:, Hp:2 * Hp])
        n = jnp.tanh(gx[:, 2 * Hp:3 * Hp]
                     + r * (gh[:, 2 * Hp:3 * Hp] + bhhn_ref[...]))
        return (1.0 - z) * n + z * h

    h0 = jnp.zeros((Bp, Hp), jnp.float32)
    h_last = jax.lax.fori_loop(0, T, step, h0, unroll=True)

    # (3) Output head on the last hidden state (== outputs[-1] for a single-layer
    #     unidirectional GRU): linear -> sigmoid, lane-dense (Bp, Lp) output.
    # TODO(synk): nn.Dropout(p=0.1) is identity in eval mode; training-mode dropout not modeled.
    logits = jnp.dot(h_last, wo_ref[...], preferred_element_type=jnp.float32) + bo_ref[...]
    out_ref[...] = jax.nn.sigmoid(logits)


@jax.jit
def rnn_gru_forward(input_seqs, embed_table, w_ih, w_hh, b_ih, b_hh, w_out, b_out):
    """input_seqs: (T, B) int32. Weights pre-transposed for x @ W form, gate order [r|z|n].
    Returns (B, num_labels) float32 probabilities."""
    T, B = input_seqs.shape
    E = embed_table.shape[1]
    H = w_hh.shape[0]          # w_hh is (H, 3H)  (bugfix: was shape[1] == 3H)
    L = w_out.shape[1]

    Bp = _round_up(max(B, 8), 8)         # sublane tile
    Ep = _round_up(max(E, 128), 128)     # lane tiles
    Hp = _round_up(max(H, 128), 128)
    Lp = _round_up(max(L, 128), 128)

    # Embedding lookup (glue). padding_idx=0 handled by zero row 0 of the table.
    # TODO(synk): at large T*B*E move the gather in-kernel (scalar-prefetched token ids)
    # instead of materializing the full activation tensor via jnp.take.
    embedded = jnp.take(embed_table, input_seqs, axis=0).astype(jnp.float32)   # (T, B, E)
    embedded = jnp.pad(embedded, ((0, 0), (0, Bp - B), (0, Ep - E)))           # (T, Bp, Ep)

    def pad_gate_cols(w, rows_pad):
        # (rows, 3H) -> (rows_pad, 3*Hp): gate g lives at columns [g*Hp, g*Hp+H), zeros elsewhere.
        out = jnp.zeros((rows_pad, 3 * Hp), jnp.float32)
        for g in range(3):
            out = out.at[:w.shape[0], g * Hp:g * Hp + H].set(w[:, g * H:(g + 1) * H])
        return out

    w_ih_p = pad_gate_cols(w_ih, Ep)                        # (Ep, 3*Hp)
    w_hh_p = pad_gate_cols(w_hh, Hp)                        # (Hp, 3*Hp)

    # Fold b_hh's r/z parts into the precomputed-gx bias; keep only the n-gate
    # recurrent bias (it must sit inside the r* term in the loop).
    b_gx = b_ih + jnp.concatenate([b_hh[:2 * H], jnp.zeros((H,), b_hh.dtype)])
    b_gx_p = pad_gate_cols(b_gx.reshape(1, 3 * H), 1)       # (1, 3*Hp)
    b_hh_n = jnp.zeros((1, Hp), jnp.float32).at[0, :H].set(b_hh[2 * H:])

    w_out_p = jnp.zeros((Hp, Lp), jnp.float32).at[:H, :L].set(w_out)
    b_out_p = jnp.zeros((1, Lp), jnp.float32).at[0, :L].set(b_out)

    vmem = pl.BlockSpec(memory_space=pltpu.MemorySpace.VMEM)
    out = pl.pallas_call(
        gru_kernel,
        out_shape=jax.ShapeDtypeStruct((Bp, Lp), jnp.float32),
        in_specs=[vmem] * 7,
        out_specs=vmem,
        scratch_shapes=[pltpu.VMEM((T * Bp, 3 * Hp), jnp.float32)],   # precomputed gx
    )(embedded, w_ih_p, w_hh_p, b_gx_p, b_hh_n, w_out_p, b_out_p)

    return out[:B, :L]


def reference_forward(input_seqs, embed_table, w_ih, w_hh, b_ih, b_hh, w_out, b_out):
    """Pure-JAX reference (same math, unpadded) for correctness checking."""
    H = w_hh.shape[0]
    embedded = jnp.take(embed_table, input_seqs, axis=0)           # (T, B, E)
    B = embedded.shape[1]

    def step(h, x_t):
        gx = x_t @ w_ih + b_ih
        gh = h @ w_hh + b_hh
        r = jax.nn.sigmoid(gx[:, :H] + gh[:, :H])
        z = jax.nn.sigmoid(gx[:, H:2 * H] + gh[:, H:2 * H])
        n = jnp.tanh(gx[:, 2 * H:] + r * gh[:, 2 * H:])
        h_new = (1.0 - z) * n + z * h
        return h_new, None

    h0 = jnp.zeros((B, H), jnp.float32)
    h_last, _ = jax.lax.scan(step, h0, embedded)
    return jax.nn.sigmoid(h_last @ w_out + b_out)


if __name__ == "__main__":
    # Small, deterministic synthetic configuration.
    vocab_size = 24          # -> embedding table has vocab_size + 1 rows
    emb_dim = 32
    hidden_size = 32
    num_labels = 10
    T, B = 8, 4              # (seq_len, batch) — time-major like nn.GRU default

    key = jax.random.PRNGKey(0)
    k_emb, k_wih, k_whh, k_bih, k_bhh, k_wo, k_bo, k_seq = jax.random.split(key, 8)

    bound = 1.0 / jnp.sqrt(hidden_size)
    embed_table = jax.random.normal(k_emb, (vocab_size + 1, emb_dim), jnp.float32)
    embed_table = embed_table.at[0].set(0.0)                       # padding_idx=0

    # GRU params, pre-transposed for x @ W form; gate order [r | z | n].
    w_ih = jax.random.uniform(k_wih, (emb_dim, 3 * hidden_size), jnp.float32, -bound, bound)
    w_hh = jax.random.uniform(k_whh, (hidden_size, 3 * hidden_size), jnp.float32, -bound, bound)
    b_ih = jax.random.uniform(k_bih, (3 * hidden_size,), jnp.float32, -bound, bound)
    b_hh = jax.random.uniform(k_bhh, (3 * hidden_size,), jnp.float32, -bound, bound)

    # Output head (Linear(hidden_size, num_labels)), pre-transposed.
    w_out = jax.random.uniform(k_wo, (hidden_size, num_labels), jnp.float32, -bound, bound)
    b_out = jax.random.uniform(k_bo, (num_labels,), jnp.float32, -bound, bound)

    input_seqs = jax.random.randint(k_seq, (T, B), 0, vocab_size + 1, jnp.int32)

    out = rnn_gru_forward(input_seqs, embed_table, w_ih, w_hh, b_ih, b_hh, w_out, b_out)
    out = jax.block_until_ready(out)

    ref = reference_forward(input_seqs, embed_table, w_ih, w_hh, b_ih, b_hh, w_out, b_out)
    assert out.shape == (B, num_labels)
    assert jnp.allclose(out, ref, atol=1e-4, rtol=1e-4), "Pallas kernel mismatch vs reference"

    print("KERNEL_OK")
</pallas_src>

<mosaic_0001>
module attributes {stable_mosaic.version = 11 : i64} {
  func.func @gru_kernel(%arg0: memref<8x8x128xf32, #tpu.memory_space<vmem>>, %arg1: memref<128x384xf32, #tpu.memory_space<vmem>>, %arg2: memref<128x384xf32, #tpu.memory_space<vmem>>, %arg3: memref<1x384xf32, #tpu.memory_space<vmem>>, %arg4: memref<1x128xf32, #tpu.memory_space<vmem>>, %arg5: memref<128x128xf32, #tpu.memory_space<vmem>>, %arg6: memref<1x128xf32, #tpu.memory_space<vmem>>, %arg7: memref<8x128xf32, #tpu.memory_space<vmem>>, %arg8: memref<64x384xf32, #tpu.memory_space<vmem>>) attributes {dimension_semantics = [], scalar_prefetch = 0 : i64, scratch_operands = 1 : i64, tpu.core_type = #tpu.core_type<tc>} {
    %c0 = arith.constant 0 : index
    %c0_0 = arith.constant 0 : index
    %c0_1 = arith.constant 0 : index
    %0 = vector.load %arg0[%c0, %c0_0, %c0_1] : memref<8x8x128xf32, #tpu.memory_space<vmem>>, vector<8x8x128xf32>
    %1 = vector.shape_cast %0 : vector<8x8x128xf32> to vector<64x128xf32>
    %c0_2 = arith.constant 0 : index
    %c0_3 = arith.constant 0 : index
    %2 = vector.load %arg1[%c0_2, %c0_3] : memref<128x384xf32, #tpu.memory_space<vmem>>, vector<128x384xf32>
    %cst = arith.constant dense<0.000000e+00> : vector<64x384xf32>
    %3 = tpu.matmul %1, %2, %cst {dimension_numbers = #tpu.dot_dimension_numbers<[1], [0], [0], [1], [0, 0, 1, 1], [], []>} : vector<64x128xf32>, vector<128x384xf32>, vector<64x384xf32> -> vector<64x384xf32>
    %c0_4 = arith.constant 0 : index
    %c0_5 = arith.constant 0 : index
    %4 = vector.load %arg3[%c0_4, %c0_5] : memref<1x384xf32, #tpu.memory_space<vmem>>, vector<1x384xf32>
    %5 = vector.broadcast %4 : vector<1x384xf32> to vector<64x384xf32>
    %6 = arith.addf %3, %5 : vector<64x384xf32>
    %c0_6 = arith.constant 0 : index
    %c0_7 = arith.constant 0 : index
    %7 = vector.load %arg8[%c0_6, %c0_7] : memref<64x384xf32, #tpu.memory_space<vmem>>, vector<64x384xf32>
    tpu.vector_store %arg8[%c0_6, %c0_7], %6 {strides = array<i32>} : memref<64x384xf32, #tpu.memory_space<vmem>>, vector<64x384xf32>,
    %cst_8 = arith.constant 0.000000e+00 : f32
    %8 = vector.broadcast %cst_8 : f32 to vector<8x128xf32>
    %c0_i32 = arith.constant 0 : i32
    %c8_i32 = arith.constant 8 : i32
    %9 = arith.muli %c0_i32, %c8_i32 : i32
    %10 = tpu.assume_multiple %9, 8 : i32
    %11 = arith.index_cast %10 : i32 to index
    %c0_9 = arith.constant 0 : index
    %12 = vector.load %arg8[%11, %c0_9] : memref<64x384xf32, #tpu.memory_space<vmem>>, vector<8x384xf32>
    %c0_10 = arith.constant 0 : index
    %c0_11 = arith.constant 0 : index
    %13 = vector.load %arg2[%c0_10, %c0_11] : memref<128x384xf32, #tpu.memory_space<vmem>>, vector<128x384xf32>
    %cst_12 = arith.constant dense<0.000000e+00> : vector<8x384xf32>
    %14 = tpu.matmul %8, %13, %cst_12 {dimension_numbers = #tpu.dot_dimension_numbers<[1], [0], [0], [1], [0, 0, 1, 1], [], []>} : vector<8x128xf32>, vector<128x384xf32>, vector<8x384xf32> -> vector<8x384xf32>
    %15 = vector.extract_strided_slice %12 {offsets = [0, 0], sizes = [8, 128], strides = [1, 1]} : vector<8x384xf32> to vector<8x128xf32>
    %16 = vector.extract_strided_slice %14 {offsets = [0, 0], sizes = [8, 128], strides = [1, 1]} : vector<8x384xf32> to vector<8x128xf32>
    %17 = arith.addf %15, %16 : vector<8x128xf32>
    %18 = arith.negf %17 : vector<8x128xf32>
    %19 = math.exp %18 : vector<8x128xf32>
    %cst_13 = arith.constant 1.000000e+00 : f32
    %20 = vector.broadcast %cst_13 : f32 to vector<8x128xf32>
    %21 = arith.addf %20, %19 : vector<8x128xf32>
    %22 = arith.divf %20, %21 : vector<8x128xf32>
    %23 = vector.extract_strided_slice %12 {offsets = [0, 128], sizes = [8, 128], strides = [1, 1]} : vector<8x384xf32> to vector<8x128xf32>
    %24 = vector.extract_strided_slice %14 {offsets = [0, 128], sizes = [8, 128], strides = [1, 1]} : vector<8x384xf32> to vector<8x128xf32>
    %25 = arith.addf %23, %24 : vector<8x128xf32>
    %26 = arith.negf %25 : vector<8x128xf32>
    %27 = math.exp %26 : vector<8x128xf32>
    %cst_14 = arith.constant 1.000000e+00 : f32
    %28 = vector.broadcast %cst_14 : f32 to vector<8x128xf32>
    %29 = arith.addf %28, %27 : vector<8x128xf32>
    %30 = arith.divf %28, %29 : vector<8x128xf32>
    %31 = vector.extract_strided_slice %12 {offsets = [0, 256], sizes = [8, 128], strides = [1, 1]} : vector<8x384xf32> to vector<8x128xf32>
    %32 = vector.extract_strided_slice %14 {offsets = [0, 256], sizes = [8, 128], strides = [1, 1]} : vector<8x384xf32> to vector<8x128xf32>
    %c0_15 = arith.constant 0 : index
    %c0_16 = arith.constant 0 : index
    %33 = vector.load %arg4[%c0_15, %c0_16] : memref<1x128xf32, #tpu.memory_space<vmem>>, vector<1x128xf32>
    %34 = vector.broadcast %33 : vector<1x128xf32> to vector<8x128xf32>
    %35 = arith.addf %32, %34 : vector<8x128xf32>
    %36 = arith.mulf %22, %35 : vector<8x128xf32>
    %37 = arith.addf %31, %36 : vector<8x128xf32>
    %38 = math.tanh %37 : vector<8x128xf32>
    %cst_17 = arith.constant 1.000000e+00 : f32
    %39 = vector.broadcast %cst_17 : f32 to vector<8x128xf32>
    %40 = arith.subf %39, %30 : vector<8x128xf32>
    %41 = arith.mulf %40, %38 : vector<8x128xf32>
    %42 = arith.mulf %30, %8 : vector<8x128xf32>
    %43 = arith.addf %41, %42 : vector<8x128xf32>
    %c1_i32 = arith.constant 1 : i32
    %c8_i32_18 = arith.constant 8 : i32
    %44 = arith.muli %c1_i32, %c8_i32_18 : i32
    %45 = tpu.assume_multiple %44, 8 : i32
    %46 = arith.index_cast %45 : i32 to index
    %c0_19 = arith.constant 0 : index
    %47 = vector.load %arg8[%46, %c0_19] : memref<64x384xf32, #tpu.memory_space<vmem>>, vector<8x384xf32>
    %c0_20 = arith.constant 0 : index
    %c0_21 = arith.constant 0 : index
    %48 = vector.load %arg2[%c0_20, %c0_21] : memref<128x384xf32, #tpu.memory_space<vmem>>, vector<128x384xf32>
    %cst_22 = arith.constant dense<0.000000e+00> : vector<8x384xf32>
    %49 = tpu.matmul %43, %48, %cst_22 {dimension_numbers = #tpu.dot_dimension_numbers<[1], [0], [0], [1], [0, 0, 1, 1], [], []>} : vector<8x128xf32>, vector<128x384xf32>, vector<8x384xf32> -> vector<8x384xf32>
    %50 = vector.extract_strided_slice %47 {offsets = [0, 0], sizes = [8, 128], strides = [1, 1]} : vector<8x384xf32> to vector<8x128xf32>
    %51 = vector.extract_strided_slice %49 {offsets = [0, 0], sizes = [8, 128], strides = [1, 1]} : vector<8x384xf32> to vector<8x128xf32>
    %52 = arith.addf %50, %51 : vector<8x128xf32>
    %53 = arith.negf %52 : vector<8x128xf32>
    %54 = math.exp %53 : vector<8x128xf32>
    %cst_23 = arith.constant 1.000000e+00 : f32
    %55 = vector.broadcast %cst_23 : f32 to vector<8x128xf32>
    %56 = arith.addf %55, %54 : vector<8x128xf32>
    %57 = arith.divf %55, %56 : vector<8x128xf32>
    %58 = vector.extract_strided_slice %47 {offsets = [0, 128], sizes = [8, 128], strides = [1, 1]} : vector<8x384xf32> to vector<8x128xf32>
    %59 = vector.extract_strided_slice %49 {offsets = [0, 128], sizes = [8, 128], strides = [1, 1]} : vector<8x384xf32> to vector<8x128xf32>
    %60 = arith.addf %58, %59 : vector<8x128xf32>
    %61 = arith.negf %60 : vector<8x128xf32>
    %62 = math.exp %61 : vector<8x128xf32>
    %cst_24 = arith.constant 1.000000e+00 : f32
    %63 = vector.broadcast %cst_24 : f32 to vector<8x128xf32>
    %64 = arith.addf %63, %62 : vector<8x128xf32>
    %65 = arith.divf %63, %64 : vector<8x128xf32>
    %66 = vector.extract_strided_slice %47 {offsets = [0, 256], sizes = [8, 128], strides = [1, 1]} : vector<8x384xf32> to vector<8x128xf32>
    %67 = vector.extract_strided_slice %49 {offsets = [0, 256], sizes = [8, 128], strides = [1, 1]} : vector<8x384xf32> to vector<8x128xf32>
    %c0_25 = arith.constant 0 : index
    %c0_26 = arith.constant 0 : index
    %68 = vector.load %arg4[%c0_25, %c0_26] : memref<1x128xf32, #tpu.memory_space<vmem>>, vector<1x128xf32>
    %69 = vector.broadcast %68 : vector<1x128xf32> to vector<8x128xf32>
    %70 = arith.addf %67, %69 : vector<8x128xf32>
    %71 = arith.mulf %57, %70 : vector<8x128xf32>
    %72 = arith.addf %66, %71 : vector<8x128xf32>
    %73 = math.tanh %72 : vector<8x128xf32>
    %cst_27 = arith.constant 1.000000e+00 : f32
    %74 = vector.broadcast %cst_27 : f32 to vector<8x128xf32>
    %75 = arith.subf %74, %65 : vector<8x128xf32>
    %76 = arith.mulf %75, %73 : vector<8x128xf32>
    %77 = arith.mulf %65, %43 : vector<8x128xf32>
    %78 = arith.addf %76, %77 : vector<8x128xf32>
    %c2_i32 = arith.constant 2 : i32
    %c8_i32_28 = arith.constant 8 : i32
    %79 = arith.muli %c2_i32, %c8_i32_28 : i32
    %80 = tpu.assume_multiple %79, 8 : i32
    %81 = arith.index_cast %80 : i32 to index
    %c0_29 = arith.constant 0 : index
    %82 = vector.load %arg8[%81, %c0_29] : memref<64x384xf32, #tpu.memory_space<vmem>>, vector<8x384xf32>
    %c0_30 = arith.constant 0 : index
    %c0_31 = arith.constant 0 : index
    %83 = vector.load %arg2[%c0_30, %c0_31] : memref<128x384xf32, #tpu.memory_space<vmem>>, vector<128x384xf32>
    %cst_32 = arith.constant dense<0.000000e+00> : vector<8x384xf32>
    %84 = tpu.matmul %78, %83, %cst_32 {dimension_numbers = #tpu.dot_dimension_numbers<[1], [0], [0], [1], [0, 0, 1, 1], [], []>} : vector<8x128xf32>, vector<128x384xf32>, vector<8x384xf32> -> vector<8x384xf32>
    %85 = vector.extract_strided_slice %82 {offsets = [0, 0], sizes = [8, 128], strides = [1, 1]} : vector<8x384xf32> to vector<8x128xf32>
    %86 = vector.extract_strided_slice %84 {offsets = [0, 0], sizes = [8, 128], strides = [1, 1]} : vector<8x384xf32> to vector<8x128xf32>
    %87 = arith.addf %85, %86 : vector<8x128xf32>
    %88 = arith.negf %87 : vector<8x128xf32>
    %89 = math.exp %88 : vector<8x128xf32>
    %cst_33 = arith.constant 1.000000e+00 : f32
    %90 = vector.broadcast %cst_33 : f32 to vector<8x128xf32>
    %91 = arith.addf %90, %89 : vector<8x128xf32>
    %92 = arith.divf %90, %91 : vector<8x128xf32>
    %93 = vector.extract_strided_slice %82 {offsets = [0, 128], sizes = [8, 128], strides = [1, 1]} : vector<8x384xf32> to vector<8x128xf32>
    %94 = vector.extract_strided_slice %84 {offsets = [0, 128], sizes = [8, 128], strides = [1, 1]} : vector<8x384xf32> to vector<8x128xf32>
    %95 = arith.addf %93, %94 : vector<8x128xf32>
    %96 = arith.negf %95 : vector<8x128xf32>
    %97 = math.exp %96 : vector<8x128xf32>
    %cst_34 = arith.constant 1.000000e+00 : f32
    %98 = vector.broadcast %cst_34 : f32 to vector<8x128xf32>
    %99 = arith.addf %98, %97 : vector<8x128xf32>
    %100 = arith.divf %98, %99 : vector<8x128xf32>
    %101 = vector.extract_strided_slice %82 {offsets = [0, 256], sizes = [8, 128], strides = [1, 1]} : vector<8x384xf32> to vector<8x128xf32>
    %102 = vector.extract_strided_slice %84 {offsets = [0, 256], sizes = [8, 128], strides = [1, 1]} : vector<8x384xf32> to vector<8x128xf32>
    %c0_35 = arith.constant 0 : index
    %c0_36 = arith.constant 0 : index
    %103 = vector.load %arg4[%c0_35, %c0_36] : memref<1x128xf32, #tpu.memory_space<vmem>>, vector<1x128xf32>
    %104 = vector.broadcast %103 : vector<1x128xf32> to vector<8x128xf32>
    %105 = arith.addf %102, %104 : vector<8x128xf32>
    %106 = arith.mulf %92, %105 : vector<8x128xf32>
    %107 = arith.addf %101, %106 : vector<8x128xf32>
    %108 = math.tanh %107 : vector<8x128xf32>
    %cst_37 = arith.constant 1.000000e+00 : f32
    %109 = vector.broadcast %cst_37 : f32 to vector<8x128xf32>
    %110 = arith.subf %109, %100 : vector<8x128xf32>
    %111 = arith.mulf %110, %108 : vector<8x128xf32>
    %112 = arith.mulf %100, %78 : vector<8x128xf32>
    %113 = arith.addf %111, %112 : vector<8x128xf32>
    %c3_i32 = arith.constant 3 : i32
    %c8_i32_38 = arith.constant 8 : i32
    %114 = arith.muli %c3_i32, %c8_i32_38 : i32
    %115 = tpu.assume_multiple %114, 8 : i32
    %116 = arith.index_cast %115 : i32 to index
    %c0_39 = arith.constant 0 : index
    %117 = vector.load %arg8[%116, %c0_39] : memref<64x384xf32, #tpu.memory_space<vmem>>, vector<8x384xf32>
    %c0_40 = arith.constant 0 : index
    %c0_41 = arith.constant 0 : index
    %118 = vector.load %arg2[%c0_40, %c0_41] : memref<128x384xf32, #tpu.memory_space<vmem>>, vector<128x384xf32>
    %cst_42 = arith.constant dense<0.000000e+00> : vector<8x384xf32>
    %119 = tpu.matmul %113, %118, %cst_42 {dimension_numbers = #tpu.dot_dimension_numbers<[1], [0], [0], [1], [0, 0, 1, 1], [], []>} : vector<8x128xf32>, vector<128x384xf32>, vector<8x384xf32> -> vector<8x384xf32>
    %120 = vector.extract_strided_slice %117 {offsets = [0, 0], sizes = [8, 128], strides = [1, 1]} : vector<8x384xf32> to vector<8x128xf32>
    %121 = vector.extract_strided_slice %119 {offsets = [0, 0], sizes = [8, 128], strides = [1, 1]} : vector<8x384xf32> to vector<8x128xf32>
    %122 = arith.addf %120, %121 : vector<8x128xf32>
    %123 = arith.negf %122 : vector<8x128xf32>
    %124 = math.exp %123 : vector<8x128xf32>
    %cst_43 = arith.constant 1.000000e+00 : f32
    %125 = vector.broadcast %cst_43 : f32 to vector<8x128xf32>
    %126 = arith.addf %125, %124 : vector<8x128xf32>
    %127 = arith.divf %125, %126 : vector<8x128xf32>
    %128 = vector.extract_strided_slice %117 {offsets = [0, 128], sizes = [8, 128], strides = [1, 1]} : vector<8x384xf32> to vector<8x128xf32>
    %129 = vector.extract_strided_slice %119 {offsets = [0, 128], sizes = [8, 128], strides = [1, 1]} : vector<8x384xf32> to vector<8x128xf32>
    %130 = arith.addf %128, %129 : vector<8x128xf32>
    %131 = arith.negf %130 : vector<8x128xf32>
    %132 = math.exp %131 : vector<8x128xf32>
    %cst_44 = arith.constant 1.000000e+00 : f32
    %133 = vector.broadcast %cst_44 : f32 to vector<8x128xf32>
    %134 = arith.addf %133, %132 : vector<8x128xf32>
    %135 = arith.divf %133, %134 : vector<8x128xf32>
    %136 = vector.extract_strided_slice %117 {offsets = [0, 256], sizes = [8, 128], strides = [1, 1]} : vector<8x384xf32> to vector<8x128xf32>
    %137 = vector.extract_strided_slice %119 {offsets = [0, 256], sizes = [8, 128], strides = [1, 1]} : vector<8x384xf32> to vector<8x128xf32>
    %c0_45 = arith.constant 0 : index
    %c0_46 = arith.constant 0 : index
    %138 = vector.load %arg4[%c0_45, %c0_46] : memref<1x128xf32, #tpu.memory_space<vmem>>, vector<1x128xf32>
    %139 = vector.broadcast %138 : vector<1x128xf32> to vector<8x128xf32>
    %140 = arith.addf %137, %139 : vector<8x128xf32>
    %141 = arith.mulf %127, %140 : vector<8x128xf32>
    %142 = arith.addf %136, %141 : vector<8x128xf32>
    %143 = math.tanh %142 : vector<8x128xf32>
    %cst_47 = arith.constant 1.000000e+00 : f32
    %144 = vector.broadcast %cst_47 : f32 to vector<8x128xf32>
    %145 = arith.subf %144, %135 : vector<8x128xf32>
    %146 = arith.mulf %145, %143 : vector<8x128xf32>
    %147 = arith.mulf %135, %113 : vector<8x128xf32>
    %148 = arith.addf %146, %147 : vector<8x128xf32>
    %c4_i32 = arith.constant 4 : i32
    %c8_i32_48 = arith.constant 8 : i32
    %149 = arith.muli %c4_i32, %c8_i32_48 : i32
    %150 = tpu.assume_multiple %149, 8 : i32
    %151 = arith.index_cast %150 : i32 to index
    %c0_49 = arith.constant 0 : index
    %152 = vector.load %arg8[%151, %c0_49] : memref<64x384xf32, #tpu.memory_space<vmem>>, vector<8x384xf32>
    %c0_50 = arith.constant 0 : index
    %c0_51 = arith.constant 0 : index
    %153 = vector.load %arg2[%c0_50, %c0_51] : memref<128x384xf32, #tpu.memory_space<vmem>>, vector<128x384xf32>
    %cst_52 = arith.constant dense<0.000000e+00> : vector<8x384xf32>
    %154 = tpu.matmul %148, %153, %cst_52 {dimension_numbers = #tpu.dot_dimension_numbers<[1], [0], [0], [1], [0, 0, 1, 1], [], []>} : vector<8x128xf32>, vector<128x384xf32>, vector<8x384xf32> -> vector<8x384xf32>
    %155 = vector.extract_strided_slice %152 {offsets = [0, 0], sizes = [8, 128], strides = [1, 1]} : vector<8x384xf32> to vector<8x128xf32>
    %156 = vector.extract_strided_slice %154 {offsets = [0, 0], sizes = [8, 128], strides = [1, 1]} : vector<8x384xf32> to vector<8x128xf32>
    %157 = arith.addf %155, %156 : vector<8x128xf32>
    %158 = arith.negf %157 : vector<8x128xf32>
    %159 = math.exp %158 : vector<8x128xf32>
    %cst_53 = arith.constant 1.000000e+00 : f32
    %160 = vector.broadcast %cst_53 : f32 to vector<8x128xf32>
    %161 = arith.addf %160, %159 : vector<8x128xf32>
    %162 = arith.divf %160, %161 : vector<8x128xf32>
    %163 = vector.extract_strided_slice %152 {offsets = [0, 128], sizes = [8, 128], strides = [1, 1]} : vector<8x384xf32> to vector<8x128xf32>
    %164 = vector.extract_strided_slice %154 {offsets = [0, 128], sizes = [8, 128], strides = [1, 1]} : vector<8x384xf32> to vector<8x128xf32>
    %165 = arith.addf %163, %164 : vector<8x128xf32>
    %166 = arith.negf %165 : vector<8x128xf32>
    %167 = math.exp %166 : vector<8x128xf32>
    %cst_54 = arith.constant 1.000000e+00 : f32
    %168 = vector.broadcast %cst_54 : f32 to vector<8x128xf32>
    %169 = arith.addf %168, %167 : vector<8x128xf32>
    %170 = arith.divf %168, %169 : vector<8x128xf32>
    %171 = vector.extract_strided_slice %152 {offsets = [0, 256], sizes = [8, 128], strides = [1, 1]} : vector<8x384xf32> to vector<8x128xf32>
    %172 = vector.extract_strided_slice %154 {offsets = [0, 256], sizes = [8, 128], strides = [1, 1]} : vector<8x384xf32> to vector<8x128xf32>
    %c0_55 = arith.constant 0 : index
    %c0_56 = arith.constant 0 : index
    %173 = vector.load %arg4[%c0_55, %c0_56] : memref<1x128xf32, #tpu.memory_space<vmem>>, vector<1x128xf32>
    %174 = vector.broadcast %173 : vector<1x128xf32> to vector<8x128xf32>
    %175 = arith.addf %172, %174 : vector<8x128xf32>
    %176 = arith.mulf %162, %175 : vector<8x128xf32>
    %177 = arith.addf %171, %176 : vector<8x128xf32>
    %178 = math.tanh %177 : vector<8x128xf32>
    %cst_57 = arith.constant 1.000000e+00 : f32
    %179 = vector.broadcast %cst_57 : f32 to vector<8x128xf32>
    %180 = arith.subf %179, %170 : vector<8x128xf32>
    %181 = arith.mulf %180, %178 : vector<8x128xf32>
    %182 = arith.mulf %170, %148 : vector<8x128xf32>
    %183 = arith.addf %181, %182 : vector<8x128xf32>
    %c5_i32 = arith.constant 5 : i32
    %c8_i32_58 = arith.constant 8 : i32
    %184 = arith.muli %c5_i32, %c8_i32_58 : i32
    %185 = tpu.assume_multiple %184, 8 : i32
    %186 = arith.index_cast %185 : i32 to index
    %c0_59 = arith.constant 0 : index
    %187 = vector.load %arg8[%186, %c0_59] : memref<64x384xf32, #tpu.memory_space<vmem>>, vector<8x384xf32>
    %c0_60 = arith.constant 0 : index
    %c0_61 = arith.constant 0 : index
    %188 = vector.load %arg2[%c0_60, %c0_61] : memref<128x384xf32, #tpu.memory_space<vmem>>, vector<128x384xf32>
    %cst_62 = arith.constant dense<0.000000e+00> : vector<8x384xf32>
    %189 = tpu.matmul %183, %188, %cst_62 {dimension_numbers = #tpu.dot_dimension_numbers<[1], [0], [0], [1], [0, 0, 1, 1], [], []>} : vector<8x128xf32>, vector<128x384xf32>, vector<8x384xf32> -> vector<8x384xf32>
    %190 = vector.extract_strided_slice %187 {offsets = [0, 0], sizes = [8, 128], strides = [1, 1]} : vector<8x384xf32> to vector<8x128xf32>
    %191 = vector.extract_strided_slice %189 {offsets = [0, 0], sizes = [8, 128], strides = [1, 1]} : vector<8x384xf32> to vector<8x128xf32>
    %192 = arith.addf %190, %191 : vector<8x128xf32>
    %193 = arith.negf %192 : vector<8x128xf32>
    %194 = math.exp %193 : vector<8x128xf32>
    %cst_63 = arith.constant 1.000000e+00 : f32
    %195 = vector.broadcast %cst_63 : f32 to vector<8x128xf32>
    %196 = arith.addf %195, %194 : vector<8x128xf32>
    %197 = arith.divf %195, %196 : vector<8x128xf32>
    %198 = vector.extract_strided_slice %187 {offsets = [0, 128], sizes = [8, 128], strides = [1, 1]} : vector<8x384xf32> to vector<8x128xf32>
    %199 = vector.extract_strided_slice %189 {offsets = [0, 128], sizes = [8, 128], strides = [1, 1]} : vector<8x384xf32> to vector<8x128xf32>
    %200 = arith.addf %198, %199 : vector<8x128xf32>
    %201 = arith.negf %200 : vector<8x128xf32>
    %202 = math.exp %201 : vector<8x128xf32>
    %cst_64 = arith.constant 1.000000e+00 : f32
    %203 = vector.broadcast %cst_64 : f32 to vector<8x128xf32>
    %204 = arith.addf %203, %202 : vector<8x128xf32>
    %205 = arith.divf %203, %204 : vector<8x128xf32>
    %206 = vector.extract_strided_slice %187 {offsets = [0, 256], sizes = [8, 128], strides = [1, 1]} : vector<8x384xf32> to vector<8x128xf32>
    %207 = vector.extract_strided_slice %189 {offsets = [0, 256], sizes = [8, 128], strides = [1, 1]} : vector<8x384xf32> to vector<8x128xf32>
    %c0_65 = arith.constant 0 : index
    %c0_66 = arith.constant 0 : index
    %208 = vector.load %arg4[%c0_65, %c0_66] : memref<1x128xf32, #tpu.memory_space<vmem>>, vector<1x128xf32>
    %209 = vector.broadcast %208 : vector<1x128xf32> to vector<8x128xf32>
    %210 = arith.addf %207, %209 : vector<8x128xf32>
    %211 = arith.mulf %197, %210 : vector<8x128xf32>
    %212 = arith.addf %206, %211 : vector<8x128xf32>
    %213 = math.tanh %212 : vector<8x128xf32>
    %cst_67 = arith.constant 1.000000e+00 : f32
    %214 = vector.broadcast %cst_67 : f32 to vector<8x128xf32>
    %215 = arith.subf %214, %205 : vector<8x128xf32>
    %216 = arith.mulf %215, %213 : vector<8x128xf32>
    %217 = arith.mulf %205, %183 : vector<8x128xf32>
    %218 = arith.addf %216, %217 : vector<8x128xf32>
    %c6_i32 = arith.constant 6 : i32
    %c8_i32_68 = arith.constant 8 : i32
    %219 = arith.muli %c6_i32, %c8_i32_68 : i32
    %220 = tpu.assume_multiple %219, 8 : i32
    %221 = arith.index_cast %220 : i32 to index
    %c0_69 = arith.constant 0 : index
    %222 = vector.load %arg8[%221, %c0_69] : memref<64x384xf32, #tpu.memory_space<vmem>>, vector<8x384xf32>
    %c0_70 = arith.constant 0 : index
    %c0_71 = arith.constant 0 : index
    %223 = vector.load %arg2[%c0_70, %c0_71] : memref<128x384xf32, #tpu.memory_space<vmem>>, vector<128x384xf32>
    %cst_72 = arith.constant dense<0.000000e+00> : vector<8x384xf32>
    %224 = tpu.matmul %218, %223, %cst_72 {dimension_numbers = #tpu.dot_dimension_numbers<[1], [0], [0], [1], [0, 0, 1, 1], [], []>} : vector<8x128xf32>, vector<128x384xf32>, vector<8x384xf32> -> vector<8x384xf32>
    %225 = vector.extract_strided_slice %222 {offsets = [0, 0], sizes = [8, 128], strides = [1, 1]} : vector<8x384xf32> to vector<8x128xf32>
    %226 = vector.extract_strided_slice %224 {offsets = [0, 0], sizes = [8, 128], strides = [1, 1]} : vector<8x384xf32> to vector<8x128xf32>
    %227 = arith.addf %225, %226 : vector<8x128xf32>
    %228 = arith.negf %227 : vector<8x128xf32>
    %229 = math.exp %228 : vector<8x128xf32>
    %cst_73 = arith.constant 1.000000e+00 : f32
    %230 = vector.broadcast %cst_73 : f32 to vector<8x128xf32>
    %231 = arith.addf %230, %229 : vector<8x128xf32>
    %232 = arith.divf %230, %231 : vector<8x128xf32>
    %233 = vector.extract_strided_slice %222 {offsets = [0, 128], sizes = [8, 128], strides = [1, 1]} : vector<8x384xf32> to vector<8x128xf32>
    %234 = vector.extract_strided_slice %224 {offsets = [0, 128], sizes = [8, 128], strides = [1, 1]} : vector<8x384xf32> to vector<8x128xf32>
    %235 = arith.addf %233, %234 : vector<8x128xf32>
    %236 = arith.negf %235 : vector<8x128xf32>
    %237 = math.exp %236 : vector<8x128xf32>
    %cst_74 = arith.constant 1.000000e+00 : f32
    %238 = vector.broadcast %cst_74 : f32 to vector<8x128xf32>
    %239 = arith.addf %238, %237 : vector<8x128xf32>
    %240 = arith.divf %238, %239 : vector<8x128xf32>
    %241 = vector.extract_strided_slice %222 {offsets = [0, 256], sizes = [8, 128], strides = [1, 1]} : vector<8x384xf32> to vector<8x128xf32>
    %242 = vector.extract_strided_slice %224 {offsets = [0, 256], sizes = [8, 128], strides = [1, 1]} : vector<8x384xf32> to vector<8x128xf32>
    %c0_75 = arith.constant 0 : index
    %c0_76 = arith.constant 0 : index
    %243 = vector.load %arg4[%c0_75, %c0_76] : memref<1x128xf32, #tpu.memory_space<vmem>>, vector<1x128xf32>
    %244 = vector.broadcast %243 : vector<1x128xf32> to vector<8x128xf32>
    %245 = arith.addf %242, %244 : vector<8x128xf32>
    %246 = arith.mulf %232, %245 : vector<8x128xf32>
    %247 = arith.addf %241, %246 : vector<8x128xf32>
    %248 = math.tanh %247 : vector<8x128xf32>
    %cst_77 = arith.constant 1.000000e+00 : f32
    %249 = vector.broadcast %cst_77 : f32 to vector<8x128xf32>
    %250 = arith.subf %249, %240 : vector<8x128xf32>
    %251 = arith.mulf %250, %248 : vector<8x128xf32>
    %252 = arith.mulf %240, %218 : vector<8x128xf32>
    %253 = arith.addf %251, %252 : vector<8x128xf32>
    %c7_i32 = arith.constant 7 : i32
    %c8_i32_78 = arith.constant 8 : i32
    %254 = arith.muli %c7_i32, %c8_i32_78 : i32
    %255 = tpu.assume_multiple %254, 8 : i32
    %256 = arith.index_cast %255 : i32 to index
    %c0_79 = arith.constant 0 : index
    %257 = vector.load %arg8[%256, %c0_79] : memref<64x384xf32, #tpu.memory_space<vmem>>, vector<8x384xf32>
    %c0_80 = arith.constant 0 : index
    %c0_81 = arith.constant 0 : index
    %258 = vector.load %arg2[%c0_80, %c0_81] : memref<128x384xf32, #tpu.memory_space<vmem>>, vector<128x384xf32>
    %cst_82 = arith.constant dense<0.000000e+00> : vector<8x384xf32>
    %259 = tpu.matmul %253, %258, %cst_82 {dimension_numbers = #tpu.dot_dimension_numbers<[1], [0], [0], [1], [0, 0, 1, 1], [], []>} : vector<8x128xf32>, vector<128x384xf32>, vector<8x384xf32> -> vector<8x384xf32>
    %260 = vector.extract_strided_slice %257 {offsets = [0, 0], sizes = [8, 128], strides = [1, 1]} : vector<8x384xf32> to vector<8x128xf32>
    %261 = vector.extract_strided_slice %259 {offsets = [0, 0], sizes = [8, 128], strides = [1, 1]} : vector<8x384xf32> to vector<8x128xf32>
    %262 = arith.addf %260, %261 : vector<8x128xf32>
    %263 = arith.negf %262 : vector<8x128xf32>
    %264 = math.exp %263 : vector<8x128xf32>
    %cst_83 = arith.constant 1.000000e+00 : f32
    %265 = vector.broadcast %cst_83 : f32 to vector<8x128xf32>
    %266 = arith.addf %265, %264 : vector<8x128xf32>
    %267 = arith.divf %265, %266 : vector<8x128xf32>
    %268 = vector.extract_strided_slice %257 {offsets = [0, 128], sizes = [8, 128], strides = [1, 1]} : vector<8x384xf32> to vector<8x128xf32>
    %269 = vector.extract_strided_slice %259 {offsets = [0, 128], sizes = [8, 128], strides = [1, 1]} : vector<8x384xf32> to vector<8x128xf32>
    %270 = arith.addf %268, %269 : vector<8x128xf32>
    %271 = arith.negf %270 : vector<8x128xf32>
    %272 = math.exp %271 : vector<8x128xf32>
    %cst_84 = arith.constant 1.000000e+00 : f32
    %273 = vector.broadcast %cst_84 : f32 to vector<8x128xf32>
    %274 = arith.addf %273, %272 : vector<8x128xf32>
    %275 = arith.divf %273, %274 : vector<8x128xf32>
    %276 = vector.extract_strided_slice %257 {offsets = [0, 256], sizes = [8, 128], strides = [1, 1]} : vector<8x384xf32> to vector<8x128xf32>
    %277 = vector.extract_strided_slice %259 {offsets = [0, 256], sizes = [8, 128], strides = [1, 1]} : vector<8x384xf32> to vector<8x128xf32>
    %c0_85 = arith.constant 0 : index
    %c0_86 = arith.constant 0 : index
    %278 = vector.load %arg4[%c0_85, %c0_86] : memref<1x128xf32, #tpu.memory_space<vmem>>, vector<1x128xf32>
    %279 = vector.broadcast %278 : vector<1x128xf32> to vector<8x128xf32>
    %280 = arith.addf %277, %279 : vector<8x128xf32>
    %281 = arith.mulf %267, %280 : vector<8x128xf32>
    %282 = arith.addf %276, %281 : vector<8x128xf32>
    %283 = math.tanh %282 : vector<8x128xf32>
    %cst_87 = arith.constant 1.000000e+00 : f32
    %284 = vector.broadcast %cst_87 : f32 to vector<8x128xf32>
    %285 = arith.subf %284, %275 : vector<8x128xf32>
    %286 = arith.mulf %285, %283 : vector<8x128xf32>
    %287 = arith.mulf %275, %253 : vector<8x128xf32>
    %288 = arith.addf %286, %287 : vector<8x128xf32>
    %c8_i32_88 = arith.constant 8 : i32
    %c0_89 = arith.constant 0 : index
    %c0_90 = arith.constant 0 : index
    %289 = vector.load %arg5[%c0_89, %c0_90] : memref<128x128xf32, #tpu.memory_space<vmem>>, vector<128x128xf32>
    %cst_91 = arith.constant dense<0.000000e+00> : vector<8x128xf32>
    %290 = tpu.matmul %288, %289, %cst_91 {dimension_numbers = #tpu.dot_dimension_numbers<[1], [0], [0], [1], [0, 0, 1, 1], [], []>} : vector<8x128xf32>, vector<128x128xf32>, vector<8x128xf32> -> vector<8x128xf32>
    %c0_92 = arith.constant 0 : index
    %c0_93 = arith.constant 0 : index
    %291 = vector.load %arg6[%c0_92, %c0_93] : memref<1x128xf32, #tpu.memory_space<vmem>>, vector<1x128xf32>
    %292 = vector.broadcast %291 : vector<1x128xf32> to vector<8x128xf32>
    %293 = arith.addf %290, %292 : vector<8x128xf32>
    %294 = arith.negf %293 : vector<8x128xf32>
    %295 = math.exp %294 : vector<8x128xf32>
    %cst_94 = arith.constant 1.000000e+00 : f32
    %296 = vector.broadcast %cst_94 : f32 to vector<8x128xf32>
    %297 = arith.addf %296, %295 : vector<8x128xf32>
    %298 = arith.divf %296, %297 : vector<8x128xf32>
    %c0_95 = arith.constant 0 : index
    %c0_96 = arith.constant 0 : index
    %299 = vector.load %arg7[%c0_95, %c0_96] : memref<8x128xf32, #tpu.memory_space<vmem>>, vector<8x128xf32>
    tpu.vector_store %arg7[%c0_95, %c0_96], %298 {strides = array<i32>} : memref<8x128xf32, #tpu.memory_space<vmem>>, vector<8x128xf32>,
    return
  }
}

</mosaic_0001>

<bundles_post_ra>
// kernel: rnn_gru_forward.1
= control target key start
LH: loop header
LB: loop body
LE: loop exit
PB: predicated region body
PF: predicated region fallthrough
CT: control target
= control target key end

     0   :  { %v3069_v3 = vmov 0.0   ;;  %vm3071_vm0 = vmmov 0   ;;  %s3892_s1 = inlined_call_operand.vmem [shape: f32[128,384], index: 1, kind: input, shape index: {}]   ;;  %s3893_s0 = inlined_call_operand.vmem [shape: f32[8,8,128], index: 0, kind: input, shape index: {}]   ;;  %s3894_s2 = inlined_call_operand.vmem [shape: f32[128,384], index: 2, kind: input, shape index: {}]   ;;  %s3895_s3 = inlined_call_operand.vmem [shape: f32[1,384], index: 3, kind: input, shape index: {}]   ;;  %s3896_s4 = inlined_call_operand.vmem [shape: f32[1,128], index: 4, kind: input, shape index: {}]   ;;  %s3897_s5 = inlined_call_operand.vmem [shape: f32[128,128], index: 5, kind: input, shape index: {}]   ;;  %s3898_s6 = inlined_call_operand.vmem [shape: f32[1,128], index: 6, kind: input, shape index: {}]   ;;  %s3899_s7 = inlined_call_operand.vmem [shape: f32[8,128], index: 7, kind: output, shape index: {}]  }
   0x1   :  { %v35_v0 = vld [vmem:[%s3892_s1 + $0x8] sm:$0xff]  ;;  %v38_v1 = vld [vmem:[%s3892_s1 + $0x20] sm:$0xff]  ;;  %163 = vmatprep.mubr.f32.mxu0 %v3069_v3  ;;  %v37_v5 = vld [vmem:[%s3892_s1 + $0x18] sm:$0xff] }
   0x2   :  { %v34_v2 = vld [vmem:[%s3892_s1] sm:$0xff]  ;;  %v2414_v4 = vpack.c.bf16 %v38_v1, %v35_v0  ;;  %v41_v6 = vld [vmem:[%s3892_s1 + $0x38] sm:$0xff]  ;;  %v44_v7 = vld [vmem:[%s3892_s1 + $0x50] sm:$0xff] }
   0x3   :  { %v2416_v8 = vpack.c.bf16 %v37_v5, %v34_v2  ;;  %v2418_v9 = vpack.c.bf16 %v44_v7, %v41_v6  ;;  %v40_v10 = vld [vmem:[%s3892_s1 + $0x30] sm:$0xff]  ;;  %v43_v11 = vld [vmem:[%s3892_s1 + $0x48] sm:$0xff]  ;;  %v50_v13 = vld [vmem:[%s3892_s1 + $0x80] sm:$0xff] }
   0x4   :  { %v47_v12 = vld [vmem:[%s3892_s1 + $0x68] sm:$0xff]  ;;  %2415 = vmatprep.subr.bf16.mxu0 %v2414_v4  ;;  %v2420_v14 = vpack.c.bf16 %v43_v11, %v40_v10  ;;  %v46_v16 = vld [vmem:[%s3892_s1 + $0x60] sm:$0xff]  ;;  %v49_v17 = vld [vmem:[%s3892_s1 + $0x78] sm:$0xff] }
   0x5   :  { %2417 = vmatpush1.bf16.msra.mxu0 %v2416_v8  ;;  %v2422_v15 = vpack.c.bf16 %v50_v13, %v47_v12  ;;  %v53_v18 = vld [vmem:[%s3892_s1 + $0x98] sm:$0xff]  ;;  %v56_v19 = vld [vmem:[%s3892_s1 + $0xb0] sm:$0xff]  ;;  %v2424_v20 = vpack.c.bf16 %v49_v17, %v46_v16  ;;  %v55_v23 = vld [vmem:[%s3892_s1 + $0xa8] sm:$0xff] }
   0x6   :  { %2419 = vmatprep.subr.bf16.mxu0 %v2418_v9  ;;  %v52_v21 = vld [vmem:[%s3892_s1 + $0x90] sm:$0xff]  ;;  %v2426_v22 = vpack.c.bf16 %v56_v19, %v53_v18  ;;  %v39_v25 = vld [vmem:[%s3892_s1 + $0x28] sm:$0xff]  ;;  %v62_v27 = vld [vmem:[%s3892_s1 + $0xe0] sm:$0xff] }
   0x7   :  { %v36_v24 = vld [vmem:[%s3892_s1 + $0x10] sm:$0xff]  ;;  %v59_v26 = vld [vmem:[%s3892_s1 + $0xc8] sm:$0xff]  ;;  %v42_v29 = vld [vmem:[%s3892_s1 + $0x40] sm:$0xff]  ;;  %v2428_v31 = vpack.c.bf16 %v55_v23, %v52_v21 }
   0x8   :  { %v2446_v28 = vpack.c.bf16 %v39_v25, %v36_v24  ;;  %v45_v30 = vld [vmem:[%s3892_s1 + $0x58] sm:$0xff]  ;;  %v58_v32 = vld [vmem:[%s3892_s1 + $0xc0] sm:$0xff]  ;;  %v2430_v34 = vpack.c.bf16 %v62_v27, %v59_v26  ;;  %v48_v37 = vld [vmem:[%s3892_s1 + $0x70] sm:$0xff] }
   0x9   :  { %2421 = vmatpush1.bf16.msra.mxu0 %v2420_v14  ;;  %v2450_v33 = vpack.c.bf16 %v45_v30, %v42_v29  ;;  %v61_v35 = vld [vmem:[%s3892_s1 + $0xd8] sm:$0xff]  ;;  %v3188_v36 = vld [vmem:[%s3893_s0] sm:$0xff]  ;;  %v68_v39 = vld [vmem:[%s3892_s1 + $0x110] sm:$0xff] }
   0xa   :  { %2423 = vmatprep.subr.bf16.mxu0 %v2422_v15  ;;  %2447 = vmatprep.subr.bf16.mxu1 %v2446_v28  ;;  %v65_v38 = vld [vmem:[%s3892_s1 + $0xf8] sm:$0xff]  ;;  %v51_v40 = vld [vmem:[%s3892_s1 + $0x88] sm:$0xff]  ;;  %v2432_v42 = vpack.c.bf16 %v61_v35, %v58_v32  ;;  %v54_v43 = vld [vmem:[%s3892_s1 + $0xa0] sm:$0xff] }
   0xb   :  { %2449 = vmatpush3.bf16.msra.mxu1 %v2446_v28  ;;  %2087 = vmatprep.mubr.f32.mxu1 %v3188_v36  ;;  %v2454_v41 = vpack.c.bf16 %v51_v40, %v48_v37  ;;  %v57_v44 = vld [vmem:[%s3892_s1 + $0xb8] sm:$0xff]  ;;  %v2434_v45 = vpack.c.bf16 %v68_v39, %v65_v38  ;;  %v64_v46 = vld [vmem:[%s3892_s1 + $0xf0] sm:$0xff]  ;;  %v67_v47 = vld [vmem:[%s3892_s1 + $0x108] sm:$0xff]  ;;  %v3070_v40 = vmov 0.0|0.0  }
   0xc   :  { %2451 = vmatprep.subr.bf16.mxu1 %v2450_v33  ;;  %v71_v48 = vld [vmem:[%s3892_s1 + $0x128] sm:$0xff]  ;;  %v74_v49 = vld [vmem:[%s3892_s1 + $0x140] sm:$0xff]  ;;  %v2458_v50 = vpack.c.bf16 %v57_v44, %v54_v43  ;;  %v60_v51 = vld [vmem:[%s3892_s1 + $0xd0] sm:$0xff]  ;;  %v2436_v53 = vpack.c.bf16 %v67_v47, %v64_v46 }
   0xd   :  { %2425 = vmatpush1.bf16.msra.mxu0 %v2424_v20  ;;  %v63_v52 = vld [vmem:[%s3892_s1 + $0xe8] sm:$0xff]  ;;  %v2438_v54 = vpack.c.bf16 %v74_v49, %v71_v48  ;;  %v70_v55 = vld [vmem:[%s3892_s1 + $0x120] sm:$0xff]  ;;  %v73_v56 = vld [vmem:[%s3892_s1 + $0x138] sm:$0xff] }
   0xe   :  { %2427 = vmatprep.subr.bf16.mxu0 %v2426_v22  ;;  %v77_v57 = vld [vmem:[%s3892_s1 + $0x158] sm:$0xff]  ;;  %v80_v58 = vld [vmem:[%s3892_s1 + $0x170] sm:$0xff]  ;;  %v2462_v59 = vpack.c.bf16 %v63_v52, %v60_v51  ;;  %v66_v60 = vld [vmem:[%s3892_s1 + $0x100] sm:$0xff]  ;;  %v2440_v62 = vpack.c.bf16 %v73_v56, %v70_v55 }
   0xf   :  { %2453 = vmatpush3.bf16.msra.mxu1 %v2450_v33  ;;  %v69_v61 = vld [vmem:[%s3892_s1 + $0x118] sm:$0xff]  ;;  %v2442_v63 = vpack.c.bf16 %v80_v58, %v77_v57  ;;  %v76_v0 = vld [vmem:[%s3892_s1 + $0x150] sm:$0xff]  ;;  %v79_v1 = vld [vmem:[%s3892_s1 + $0x168] sm:$0xff] }
  0x10   :  { %2455 = vmatprep.subr.bf16.mxu1 %v2454_v41  ;;  %v348_v2 = vld [vmem:[%s3894_s2 + $0x8] sm:$0xff]  ;;  %v351_v4 = vld [vmem:[%s3894_s2 + $0x20] sm:$0xff]  ;;  %v2466_v5 = vpack.c.bf16 %v69_v61, %v66_v60  ;;  %v72_v6 = vld [vmem:[%s3892_s1 + $0x130] sm:$0xff]  ;;  %v2444_v8 = vpack.c.bf16 %v79_v1, %v76_v0 }
  0x11   :  { %2429 = vmatpush1.bf16.msra.mxu0 %v2428_v31  ;;  %v75_v7 = vld [vmem:[%s3892_s1 + $0x148] sm:$0xff]  ;;  %v3263_v9 = vpack.c.bf16 %v351_v4, %v348_v2  ;;  %v347_v10 = vld [vmem:[%s3894_s2] sm:$0xff]  ;;  %v350_v11 = vld [vmem:[%s3894_s2 + $0x18] sm:$0xff] }
  0x12   :  { %2431 = vmatprep.subr.bf16.mxu0 %v2430_v34  ;;  %v354_v12 = vld [vmem:[%s3894_s2 + $0x38] sm:$0xff]  ;;  %v357_v13 = vld [vmem:[%s3894_s2 + $0x50] sm:$0xff]  ;;  %v2470_v14 = vpack.c.bf16 %v75_v7, %v72_v6  ;;  %v78_v15 = vld [vmem:[%s3892_s1 + $0x160] sm:$0xff]  ;;  %v3283_v17 = vpack.c.bf16 %v350_v11, %v347_v10 }
  0x13   :  { %2457 = vmatpush3.bf16.msra.mxu1 %v2454_v41  ;;  %v81_v16 = vld [vmem:[%s3892_s1 + $0x178] sm:$0xff]  ;;  %v3286_v18 = vpack.c.bf16 %v357_v13, %v354_v12  ;;  %v353_v19 = vld [vmem:[%s3894_s2 + $0x30] sm:$0xff]  ;;  %v356_v20 = vld [vmem:[%s3894_s2 + $0x48] sm:$0xff] }
  0x14   :  { %2459 = vmatprep.subr.bf16.mxu1 %v2458_v50  ;;  %v360_v21 = vld [vmem:[%s3894_s2 + $0x68] sm:$0xff]  ;;  %v363_v22 = vld [vmem:[%s3894_s2 + $0x80] sm:$0xff]  ;;  %v2474_v23 = vpack.c.bf16 %v81_v16, %v78_v15  ;;  %v3306_v25 = vpack.c.bf16 %v356_v20, %v353_v19  ;;  %v362_v28 = vld [vmem:[%s3894_s2 + $0x78] sm:$0xff] }
  0x15   :  { %2433 = vmatpush1.bf16.msra.mxu0 %v2432_v42  ;;  %v27_v24 = vld [vmem:[%s3893_s0 + $0x8] sm:$0xff]  ;;  %v3309_v26 = vpack.c.bf16 %v363_v22, %v360_v21  ;;  %v359_v27 = vld [vmem:[%s3894_s2 + $0x60] sm:$0xff]  ;;  %v366_v29 = vld [vmem:[%s3894_s2 + $0x98] sm:$0xff] }
  0x16   :  { %2435 = vmatprep.subr.bf16.mxu0 %v2434_v45  ;;  %v369_v30 = vld [vmem:[%s3894_s2 + $0xb0] sm:$0xff]  ;;  %v352_v32 = vld [vmem:[%s3894_s2 + $0x28] sm:$0xff]  ;;  %v3334_v34 = vpack.c.bf16 %v362_v28, %v359_v27  ;;  %v375_v39 = vld [vmem:[%s3894_s2 + $0xe0] sm:$0xff] }
  0x17   :  { %2461 = vmatpush3.bf16.msra.mxu1 %v2458_v50  ;;  %v349_v31 = vld [vmem:[%s3894_s2 + $0x10] sm:$0xff]  ;;  %v3337_v35 = vpack.c.bf16 %v369_v30, %v366_v29  ;;  %v368_v37 = vld [vmem:[%s3894_s2 + $0xa8] sm:$0xff]  ;;  %v355_v42 = vld [vmem:[%s3894_s2 + $0x40] sm:$0xff] }
  0x18   :  { %2463 = vmatprep.subr.bf16.mxu1 %v2462_v59  ;;  %v28_v33 = vld [vmem:[%s3893_s0 + $0x10] sm:$0xff]  ;;  %v372_v38 = vld [vmem:[%s3894_s2 + $0xc8] sm:$0xff]  ;;  %v3352_v41 = vpack.c.bf16 %v352_v32, %v349_v31  ;;  %v358_v43 = vld [vmem:[%s3894_s2 + $0x58] sm:$0xff] }
  0x19   :  { %2437 = vmatpush1.bf16.msra.mxu0 %v2436_v53  ;;  %v29_v44 = vld [vmem:[%s3893_s0 + $0x18] sm:$0xff]  ;;  %v3368_v46 = vpack.c.bf16 %v375_v39, %v372_v38  ;;  %v371_v47 = vld [vmem:[%s3894_s2 + $0xc0] sm:$0xff]  ;;  %v381_v50 = vld [vmem:[%s3894_s2 + $0x110] sm:$0xff]  ;;  %v3383_v51 = vpack.c.bf16 %v358_v43, %v355_v42 }
  0x1a   :  { %2439 = vmatprep.subr.bf16.mxu0 %v2438_v54  ;;  %v374_v48 = vld [vmem:[%s3894_s2 + $0xd8] sm:$0xff]  ;;  %v361_v52 = vld [vmem:[%s3894_s2 + $0x70] sm:$0xff]  ;;  %v364_v53 = vld [vmem:[%s3894_s2 + $0x88] sm:$0xff] }
  0x1b   :  { %2465 = vmatpush3.bf16.msra.mxu1 %v2462_v59  ;;  %v378_v49 = vld [vmem:[%s3894_s2 + $0xf8] sm:$0xff]  ;;  %v30_v54 = vld [vmem:[%s3893_s0 + $0x20] sm:$0xff]  ;;  %v3397_v55 = vpack.c.bf16 %v374_v48, %v371_v47  ;;  %v377_v57 = vld [vmem:[%s3894_s2 + $0xf0] sm:$0xff]  ;;  %v3415_v61 = vpack.c.bf16 %v364_v53, %v361_v52 }
  0x1c   :  { %2467 = vmatprep.subr.bf16.mxu1 %v2466_v5  ;;  %v3400_v56 = vpack.c.bf16 %v381_v50, %v378_v49  ;;  %v380_v58 = vld [vmem:[%s3894_s2 + $0x108] sm:$0xff]  ;;  %v387_v60 = vld [vmem:[%s3894_s2 + $0x140] sm:$0xff]  ;;  %v32_v2 = vld [vmem:[%s3893_s0 + $0x30] sm:$0xff] }
  0x1d   :  { %2441 = vmatpush1.bf16.msra.mxu0 %v2440_v62  ;;  %v384_v59 = vld [vmem:[%s3894_s2 + $0x128] sm:$0xff]  ;;  %v367_v62 = vld [vmem:[%s3894_s2 + $0xa0] sm:$0xff]  ;;  %v3429_v1 = vpack.c.bf16 %v380_v58, %v377_v57  ;;  %v386_v6 = vld [vmem:[%s3894_s2 + $0x138] sm:$0xff] }
  0x1e   :  { %2443 = vmatprep.subr.bf16.mxu0 %v2442_v63  ;;  %v370_v63 = vld [vmem:[%s3894_s2 + $0xb8] sm:$0xff]  ;;  %v31_v0 = vld [vmem:[%s3893_s0 + $0x28] sm:$0xff]  ;;  %v3435_v4 = vpack.c.bf16 %v387_v60, %v384_v59  ;;  %v373_v11 = vld [vmem:[%s3894_s2 + $0xd0] sm:$0xff] }
  0x1f   :  { %2469 = vmatpush3.bf16.msra.mxu1 %v2466_v5  ;;  %v383_v5 = vld [vmem:[%s3894_s2 + $0x120] sm:$0xff]  ;;  %v390_v7 = vld [vmem:[%s3894_s2 + $0x158] sm:$0xff]  ;;  %v3450_v10 = vpack.c.bf16 %v370_v63, %v367_v62  ;;  %v376_v12 = vld [vmem:[%s3894_s2 + $0xe8] sm:$0xff] }
  0x20   :  { %2471 = vmatprep.subr.bf16.mxu1 %v2470_v14  ;;  %v3461_v13 = vpack.c.bf16 %v386_v6, %v383_v5  ;;  %v389_v16 = vld [vmem:[%s3894_s2 + $0x150] sm:$0xff]  ;;  %v392_v19 = vld [vmem:[%s3894_s2 + $0x168] sm:$0xff]  ;;  %v3476_v20 = vpack.c.bf16 %v376_v12, %v373_v11  ;;  %v379_v21 = vld [vmem:[%s3894_s2 + $0x100] sm:$0xff] }
  0x21   :  { %2445 = vmatpush1.bf16.msra.mxu0 %v2444_v8  ;;  %v393_v8 = vld [vmem:[%s3894_s2 + $0x170] sm:$0xff]  ;;  %v382_v22 = vld [vmem:[%s3894_s2 + $0x118] sm:$0xff]  ;;  %v388_v28 = vld [vmem:[%s3894_s2 + $0x148] sm:$0xff] }
  0x22   :  { %2479 = vmatprep.subr.bf16.mxu0 %v3263_v9  ;;  %v3467_v15 = vpack.c.bf16 %v393_v8, %v390_v7  ;;  %v385_v27 = vld [vmem:[%s3894_s2 + $0x130] sm:$0xff]  ;;  %v391_v30 = vld [vmem:[%s3894_s2 + $0x160] sm:$0xff]  ;;  %v394_v31 = vld [vmem:[%s3894_s2 + $0x178] sm:$0xff] }
  0x23   :  { %2473 = vmatpush3.bf16.msra.mxu1 %v2470_v14  ;;  %v33_v14 = vld [vmem:[%s3893_s0 + $0x38] sm:$0xff]  ;;  %v3506_v29 = vpack.c.bf16 %v388_v28, %v385_v27  ;;  %v3520_v32 = vpack.c.bf16 %v394_v31, %v391_v30  ;;  %v82_v38 = vld [vmem:[%s3895_s3] sm:$0x7] }
  0x24   :  { %164 = vmatmul.mubr.f32.vlgmr.msra.gmra.mrb[0].mxu0 %v3188_v36  ;;  %2475 = vmatprep.subr.bf16.mxu1 %v2474_v23  ;;  %v365_v36 = vld [vmem:[%s3894_s2 + $0x90] sm:$0xff]  ;;  %v3584_v28 = vld [vmem:[%s3896_s4] ss:$0 sm:$0xff] }
  0x25   :  { %2481 = vmatpush1.bf16.msra.mxu0 %v3283_v17  ;;  %169 = vmatprep.mubr.f32.mxu0 %v3069_v3  ;;  %v3365_v45 = vpack.c.bf16 %v368_v37, %v365_v36 }
  0x26   :  { %2483 = vmatprep.subr.bf16.mxu0 %v3286_v18 }
  0x27   :  { %2477 = vmatpush3.bf16.msra.mxu1 %v2474_v23  ;;  %v3489_v23 = vpack.c.bf16 %v392_v19, %v389_v16 }
  0x28   :  { %170 = vmatmul.mubr.f32.gmra.mrb[2].mxu0 %v27_v24  ;;  %2510 = vmatprep.subr.bf16.mxu1 %v3070_v40 }
  0x29   :  { %2485 = vmatpush1.bf16.msra.mxu0 %v3306_v25  ;;  %175 = vmatprep.mubr.f32.mxu0 %v3069_v3 }
  0x2a   :  { %2487 = vmatprep.subr.bf16.mxu0 %v3309_v26  ;;  %2088 = vmatmul.mubr.f32.vlgmr.msra.gmra.mrb[0].mxu1 %v27_v24  ;;  %v3493_v24 = vpack.c.bf16 %v382_v22, %v379_v21 }
  0x2b   :  { %2512 = vmatpush3.bf16.msra.mxu1 %v3352_v41  ;;  %2090 = vmatprep.mubr.f32.mxu1 %v28_v33 }
  0x2c   :  { %176 = vmatmul.mubr.f32.gmra.mrb[4].mxu0 %v28_v33  ;;  %2513 = vmatprep.subr.bf16.mxu1 %v3070_v40  ;;  %v84_v33 = vlaneseq }
  0x2d   :  { %2489 = vmatpush1.bf16.msra.mxu0 %v3334_v34  ;;  %181 = vmatprep.mubr.f32.mxu0 %v3069_v3 }
  0x2e   :  { %2491 = vmatprep.subr.bf16.mxu0 %v3337_v35  ;;  %2091 = vmatmul.mubr.f32.gmra.mrb[2].mxu1 %v29_v44  ;;  %v85_v36 = vshrl.u32 %v84_v33, 7 }
  0x2f   :  { %2515 = vmatpush3.bf16.msra.mxu1 %v3383_v51  ;;  %2093 = vmatprep.mubr.f32.mxu1 %v30_v54 }
  0x30   :  { %182 = vmatmul.mubr.f32.gmra.mrb[6].mxu0 %v29_v44  ;;  %2516 = vmatprep.subr.bf16.mxu1 %v3070_v40  ;;  %v94_v37 = vsub.s32 2, %v85_v36  ;;  %v86_v63 = vsub.s32 0, %v85_v36 }
  0x31   :  { %2493 = vmatpush1.bf16.msra.mxu0 %v3365_v45  ;;  %187 = vmatprep.mubr.f32.mxu0 %v3069_v3 }
  0x32   :  { %2495 = vmatprep.subr.bf16.mxu0 %v3368_v46  ;;  %2094 = vmatmul.mubr.f32.gmra.mrb[4].mxu1 %v31_v0  ;;  %v95_v39 = vrot.slane %v82_v38, %v94_v37 }
  0x33   :  { %2518 = vmatpush3.bf16.msra.mxu1 %v3415_v61  ;;  %2096 = vmatprep.mubr.f32.mxu1 %v32_v2 }
  0x34   :  { %188 = vmatmul.mubr.f32.gmra.mrb[8].mxu0 %v30_v54  ;;  %2519 = vmatprep.subr.bf16.mxu1 %v3070_v40 }
  0x35   :  { %2497 = vmatpush1.bf16.msra.mxu0 %v3397_v55  ;;  %193 = vmatprep.mubr.f32.mxu0 %v3069_v3 }
  0x36   :  { %2499 = vmatprep.subr.bf16.mxu0 %v3400_v56  ;;  %2097 = vmatmul.mubr.f32.gmra.mrb[6].mxu1 %v33_v14 }
  0x37   :  { %2521 = vmatpush3.bf16.msra.mxu1 %v3450_v10  ;;  %2131 = vmatprep.mubr.msk.f32.mxu1 %vm3071_vm0, %v3069_v3 }
  0x38   :  { %194 = vmatmul.mubr.f32.gmra.mrb[10].mxu0 %v31_v0  ;;  %2522 = vmatprep.subr.bf16.mxu1 %v3070_v40  ;;  %v90_v0 = vsub.s32 1, %v85_v36 }
  0x39   :  { %2501 = vmatpush1.bf16.msra.mxu0 %v3429_v1  ;;  %199 = vmatprep.mubr.f32.mxu0 %v3069_v3 }
  0x3a   :  { %2503 = vmatprep.subr.bf16.mxu0 %v3435_v4  ;;  %v3577_v6 = vrot.slane %v82_v38, %v90_v0 }
  0x3b   :  { %2524 = vmatpush3.bf16.msra.mxu1 %v3476_v20 }
  0x3c   :  { %200 = vmatmul.mubr.f32.gmra.mrb[12].mxu0 %v32_v2  ;;  %2525 = vmatprep.subr.bf16.mxu1 %v3070_v40  ;;  %v3575_v2 = vrot.slane %v82_v38, %v86_v63 }
  0x3d   :  { %2505 = vmatpush1.bf16.msra.mxu0 %v3461_v13  ;;  %205 = vmatprep.mubr.f32.mxu0 %v3069_v3 }
  0x3e   :  { %2507 = vmatprep.subr.bf16.mxu0 %v3467_v15 }
  0x3f   :  { %2527 = vmatpush3.bf16.msra.mxu1 %v3493_v24 }
  0x40   :  { %206 = vmatmul.mubr.f32.gmra.mrb[14].mxu0 %v33_v14  ;;  %2528 = vmatprep.subr.bf16.mxu1 %v3070_v40 }
  0x41   :  { %2509 = vmatpush1.bf16.msra.mxu0 %v3489_v23  ;;  %459 = vmatprep.mubr.f32.mxu0 %v3069_v3 }
  0x42   :  { %2535 = vmatprep.subr.bf16.mxu0 %v3263_v9 }
  0x43   :  { %2530 = vmatpush3.bf16.msra.mxu1 %v3506_v29 }
  0x44   :  { %460 = vmatmul.mubr.f32.vlgmr.msra.gmra.mrb[0].mxu0 %v3069_v3  ;;  %2531 = vmatprep.subr.bf16.mxu1 %v3070_v40 }
  0x45   :  { %2537 = vmatpush1.bf16.msra.mxu0 %v3283_v17  ;;  %635 = vmatprep.mubr.f32.mxu0 %v3069_v3 }
  0x46   :  { %2539 = vmatprep.subr.bf16.mxu0 %v3286_v18 }
  0x47   :  { %2533 = vmatpush3.bf16.msra.mxu1 %v3520_v32 }
  0x48   :  { %2566 = vmatprep.subr.bf16.mxu1 %v3070_v40 }
  0x49   :  { %2541 = vmatpush1.bf16.msra.mxu0 %v3306_v25 }
  0x4a   :  { %2543 = vmatprep.subr.bf16.mxu0 %v3309_v26  ;;  %2132 = vmatmul.mubr.f32.vlgmr.msra.gmra.mrb[8].mxu1 %v3069_v3 }
  0x4b   :  { %2568 = vmatpush3.bf16.msra.mxu1 %v3352_v41  ;;  %2166 = vmatprep.mubr.msk.f32.mxu1 %vm3071_vm0, %v3069_v3 }
  0x4c   :  { %2569 = vmatprep.subr.bf16.mxu1 %v3070_v40 }
  0x4d   :  { %2545 = vmatpush1.bf16.msra.mxu0 %v3334_v34 }
  0x4e   :  { %2547 = vmatprep.subr.bf16.mxu0 %v3337_v35 }
  0x4f   :  { %2571 = vmatpush3.bf16.msra.mxu1 %v3383_v51 }
  0x50   :  { %2572 = vmatprep.subr.bf16.mxu1 %v3070_v40 }
  0x51   :  { %2549 = vmatpush1.bf16.msra.mxu0 %v3365_v45 }
  0x52   :  { %2551 = vmatprep.subr.bf16.mxu0 %v3368_v46 }
  0x53   :  { %2574 = vmatpush3.bf16.msra.mxu1 %v3415_v61 }
  0x54   :  { %2575 = vmatprep.subr.bf16.mxu1 %v3070_v40 }
  0x55   :  { %2553 = vmatpush1.bf16.msra.mxu0 %v3397_v55 }
  0x56   :  { %2555 = vmatprep.subr.bf16.mxu0 %v3400_v56 }
  0x57   :  { %2577 = vmatpush3.bf16.msra.mxu1 %v3450_v10 }
  0x58   :  { %2578 = vmatprep.subr.bf16.mxu1 %v3070_v40 }
  0x59   :  { %2557 = vmatpush1.bf16.msra.mxu0 %v3429_v1 }
  0x5a   :  { %2559 = vmatprep.subr.bf16.mxu0 %v3435_v4 }
  0x5b   :  { %2580 = vmatpush3.bf16.msra.mxu1 %v3476_v20 }
  0x5c   :  { %2581 = vmatprep.subr.bf16.mxu1 %v3070_v40 }
  0x5d   :  { %2561 = vmatpush1.bf16.msra.mxu0 %v3461_v13 }
  0x5e   :  { %2563 = vmatprep.subr.bf16.mxu0 %v3467_v15 }
  0x5f   :  { %2583 = vmatpush3.bf16.msra.mxu1 %v3493_v24 }
  0x60   :  { %2584 = vmatprep.subr.bf16.mxu1 %v3070_v40 }
  0x61   :  { %2565 = vmatpush1.bf16.msra.mxu0 %v3489_v23 }
  0x62   :  { %2591 = vmatprep.subr.bf16.mxu0 %v3263_v9 }
  0x63   :  { %2586 = vmatpush3.bf16.msra.mxu1 %v3506_v29 }
  0x64   :  { %2587 = vmatprep.subr.bf16.mxu1 %v3070_v40 }
  0x67   :  { %2589 = vmatpush3.bf16.msra.mxu1 %v3520_v32 }
  0x68   :  { %2622 = vmatprep.subr.bf16.mxu1 %v3070_v40 }
  0xfd   :  { %v2089_v42 = vpop.f32.mrb[0].mxu1 }
  0xfe   :  { %v3561_v43 = vadd.f32 %v2089_v42, %v95_v39  ;;  %v278_v44 = vpop.f32.mrb[1].mxu1 }
  0xff   :  { %v279_v36 = vadd.f32 %v278_v44, %v95_v39 }
 0x101   :  { %v2092_v47 = vpop.f32.mrb[2].mxu1 }
 0x102   :  { %v3563_v48 = vadd.f32 %v2092_v47, %v95_v39  ;;  %v288_v49 = vpop.f32.mrb[3].mxu1 }
 0x103   :  { %v3565_v50 = vadd.f32 %v288_v49, %v95_v39 }
 0x105   :  { %v2095_v52 = vpop.f32.mrb[4].mxu1 }
 0x106   :  { %v3567_v53 = vadd.f32 %v2095_v52, %v95_v39  ;;  %v298_v54 = vpop.f32.mrb[5].mxu1 }
 0x107   :  { %v3569_v57 = vadd.f32 %v298_v54, %v95_v39 }
 0x109   :  { %v2098_v58 = vpop.f32.mrb[6].mxu1 }
 0x10a   :  { %v3571_v59 = vadd.f32 %v2098_v58, %v95_v39  ;;  %v308_v60 = vpop.f32.mrb[7].mxu1 }
 0x10b   :  { %v3573_v62 = vadd.f32 %v308_v60, %v95_v39 }
 0x117   :  { %v461_v5 = vpop.f32.mrb[0].mxu0 }
 0x118   :  { %v2950_v7 = vadd.f32 %v461_v5, %v3575_v2  ;;  %v463_v8 = vpop.f32.mrb[1].mxu0 }
 0x119   :  { %v2951_v12 = vadd.f32 %v463_v8, %v3577_v6 }
 0x11a   :  { %v1859_v11 = vmul.f32 -1.442695, %v2950_v7 }
 0x11b   :  { %v1860_v14 = vmul.f32 -1.442695, %v2951_v12 }
 0x11c   :  { %2985 = vpow2.f32 %v1859_v11 }
 0x11d   :  { %v532_v16 = vpop.f32.mrb[8].mxu1  ;;  %2987 = vpow2.f32 %v1860_v14 }
 0x11e   :  { %v2133_v19 = vpop.f32.mrb[9].mxu1  ;;  %v557_v31 = vadd.f32 %v3584_v28, %v532_v16 }
 0x126   :  { %v2986_v21 = vpop.eup %2985 }
 0x127   :  { %v540_v22 = vadd.f32 1.0, %v2986_v21  ;;  %v2988_v27 = vpop.eup %2987 }
 0x128   :  { %v547_v30 = vadd.f32 1.0, %v2988_v27 }
 0x129   :  { %2989 = vrcp.f32 %v540_v22 }
 0x12a   :  { %2991 = vrcp.f32 %v547_v30 }
 0x133   :  { %v2990_v33 = vpop.eup %2989 }
 0x134   :  { %v558_v37 = vmul.f32 %v2990_v33, %v557_v31  ;;  %v2992_v42 = vpop.eup %2991 }
 0x135   :  { %v561_v47 = vsub.f32 1.0, %v2992_v42  ;;  %v563_v54 = vmul.f32 0.0, %v2992_v42 }
 0x136   :  { %v559_v38 = vadd.f32 %v558_v37, %v279_v36 }
 0x138   :  { %2993 = vtanh.f32 %v559_v38 }
 0x142   :  { %v2994_v49 = vpop.eup %2993 }
 0x143   :  { %v562_v52 = vmul.f32 %v2994_v49, %v561_v47 }
 0x145   :  { %v564_v58 = vadd.f32 %v563_v54, %v562_v52 }
 0x147   :  { %636 = vmatmul.mubr.f32.vlgmr.msra.gmra.mrb[2].mxu0 %v564_v58  ;;  %2167 = vmatmul.mubr.f32.vlgmr.msra.gmra.mrb[10].mxu1 %v564_v58 }
 0x148   :  { %2593 = vmatpush1.bf16.msra.mxu0 %v3283_v17  ;;  %2624 = vmatpush3.bf16.msra.mxu1 %v3352_v41 }
 0x149   :  { %2595 = vmatprep.subr.bf16.mxu0 %v3286_v18  ;;  %2625 = vmatprep.subr.bf16.mxu1 %v3070_v40 }
 0x14a   :  { %804 = vmatprep.mubr.f32.mxu0 %v3069_v3  ;;  %2201 = vmatprep.mubr.msk.f32.mxu1 %vm3071_vm0, %v3069_v3 }
 0x14c   :  { %2597 = vmatpush1.bf16.msra.mxu0 %v3306_v25  ;;  %2627 = vmatpush3.bf16.msra.mxu1 %v3383_v51 }
 0x14d   :  { %2599 = vmatprep.subr.bf16.mxu0 %v3309_v26  ;;  %2628 = vmatprep.subr.bf16.mxu1 %v3070_v40 }
 0x150   :  { %2601 = vmatpush1.bf16.msra.mxu0 %v3334_v34  ;;  %2630 = vmatpush3.bf16.msra.mxu1 %v3415_v61 }
 0x151   :  { %2603 = vmatprep.subr.bf16.mxu0 %v3337_v35  ;;  %2631 = vmatprep.subr.bf16.mxu1 %v3070_v40 }
 0x154   :  { %2605 = vmatpush1.bf16.msra.mxu0 %v3365_v45  ;;  %2633 = vmatpush3.bf16.msra.mxu1 %v3450_v10 }
 0x155   :  { %2607 = vmatprep.subr.bf16.mxu0 %v3368_v46  ;;  %2634 = vmatprep.subr.bf16.mxu1 %v3070_v40 }
 0x158   :  { %2609 = vmatpush1.bf16.msra.mxu0 %v3397_v55  ;;  %2636 = vmatpush3.bf16.msra.mxu1 %v3476_v20 }
 0x159   :  { %2611 = vmatprep.subr.bf16.mxu0 %v3400_v56  ;;  %2637 = vmatprep.subr.bf16.mxu1 %v3070_v40 }
 0x15c   :  { %2613 = vmatpush1.bf16.msra.mxu0 %v3429_v1  ;;  %2639 = vmatpush3.bf16.msra.mxu1 %v3493_v24 }
 0x15d   :  { %2615 = vmatprep.subr.bf16.mxu0 %v3435_v4  ;;  %2640 = vmatprep.subr.bf16.mxu1 %v3070_v40 }
 0x160   :  { %2617 = vmatpush1.bf16.msra.mxu0 %v3461_v13  ;;  %2642 = vmatpush3.bf16.msra.mxu1 %v3506_v29 }
 0x161   :  { %2619 = vmatprep.subr.bf16.mxu0 %v3467_v15  ;;  %2643 = vmatprep.subr.bf16.mxu1 %v3070_v40 }
 0x164   :  { %2621 = vmatpush1.bf16.msra.mxu0 %v3489_v23  ;;  %2645 = vmatpush3.bf16.msra.mxu1 %v3520_v32 }
 0x165   :  { %2647 = vmatprep.subr.bf16.mxu0 %v3263_v9  ;;  %2678 = vmatprep.subr.bf16.mxu1 %v3070_v40 }
 0x21a   :  { %v637_v39 = vpop.f32.mrb[2].mxu0  ;;  %v708_v44 = vpop.f32.mrb[10].mxu1 }
 0x21b   :  { %v2952_v60 = vadd.f32 %v637_v39, %v3575_v2  ;;  %v639_v63 = vpop.f32.mrb[3].mxu0  ;;  %v2168_v0 = vpop.f32.mrb[11].mxu1  ;;  %v726_v19 = vadd.f32 %v3584_v28, %v708_v44 }
 0x21c   :  { %v2953_v7 = vadd.f32 %v639_v63, %v3577_v6 }
 0x21d   :  { %v1862_v5 = vmul.f32 -1.442695, %v2952_v60 }
 0x21e   :  { %v1863_v8 = vmul.f32 -1.442695, %v2953_v7 }
 0x21f   :  { %2995 = vpow2.f32 %v1862_v5 }
 0x220   :  { %2997 = vpow2.f32 %v1863_v8 }
 0x229   :  { %v2996_v11 = vpop.eup %2995 }
 0x22a   :  { %v716_v12 = vadd.f32 1.0, %v2996_v11  ;;  %v2998_v14 = vpop.eup %2997 }
 0x22b   :  { %v723_v16 = vadd.f32 1.0, %v2998_v14 }
 0x22c   :  { %2999 = vrcp.f32 %v716_v12 }
 0x22d   :  { %3001 = vrcp.f32 %v723_v16 }
 0x236   :  { %v3000_v21 = vpop.eup %2999 }
 0x237   :  { %v727_v22 = vmul.f32 %v3000_v21, %v726_v19  ;;  %v3002_v30 = vpop.eup %3001 }
 0x238   :  { %v730_v31 = vsub.f32 1.0, %v3002_v30  ;;  %v732_v37 = vmul.f32 %v3002_v30, %v564_v58 }
 0x239   :  { %v728_v27 = vadd.f32 %v727_v22, %v3561_v43 }
 0x23b   :  { %3003 = vtanh.f32 %v728_v27 }
 0x245   :  { %v3004_v33 = vpop.eup %3003 }
 0x246   :  { %v731_v36 = vmul.f32 %v3004_v33, %v730_v31 }
 0x248   :  { %v733_v38 = vadd.f32 %v732_v37, %v731_v36 }
 0x24a   :  { %805 = vmatmul.mubr.f32.vlgmr.msra.gmra.mrb[4].mxu0 %v733_v38  ;;  %2202 = vmatmul.mubr.f32.vlgmr.msra.gmra.mrb[12].mxu1 %v733_v38 }
 0x24b   :  { %2649 = vmatpush1.bf16.msra.mxu0 %v3283_v17  ;;  %2680 = vmatpush3.bf16.msra.mxu1 %v3352_v41 }
 0x24c   :  { %2651 = vmatprep.subr.bf16.mxu0 %v3286_v18  ;;  %2681 = vmatprep.subr.bf16.mxu1 %v3070_v40 }
 0x24d   :  { %973 = vmatprep.mubr.f32.mxu0 %v3069_v3  ;;  %2236 = vmatprep.mubr.msk.f32.mxu1 %vm3071_vm0, %v3069_v3 }
 0x24f   :  { %2653 = vmatpush1.bf16.msra.mxu0 %v3306_v25  ;;  %2683 = vmatpush3.bf16.msra.mxu1 %v3383_v51 }
 0x250   :  { %2655 = vmatprep.subr.bf16.mxu0 %v3309_v26  ;;  %2684 = vmatprep.subr.bf16.mxu1 %v3070_v40 }
 0x253   :  { %2657 = vmatpush1.bf16.msra.mxu0 %v3334_v34  ;;  %2686 = vmatpush3.bf16.msra.mxu1 %v3415_v61 }
 0x254   :  { %2659 = vmatprep.subr.bf16.mxu0 %v3337_v35  ;;  %2687 = vmatprep.subr.bf16.mxu1 %v3070_v40 }
 0x257   :  { %2661 = vmatpush1.bf16.msra.mxu0 %v3365_v45  ;;  %2689 = vmatpush3.bf16.msra.mxu1 %v3450_v10 }
 0x258   :  { %2663 = vmatprep.subr.bf16.mxu0 %v3368_v46  ;;  %2690 = vmatprep.subr.bf16.mxu1 %v3070_v40 }
 0x25b   :  { %2665 = vmatpush1.bf16.msra.mxu0 %v3397_v55  ;;  %2692 = vmatpush3.bf16.msra.mxu1 %v3476_v20 }
 0x25c   :  { %2667 = vmatprep.subr.bf16.mxu0 %v3400_v56  ;;  %2693 = vmatprep.subr.bf16.mxu1 %v3070_v40 }
 0x25f   :  { %2669 = vmatpush1.bf16.msra.mxu0 %v3429_v1  ;;  %2695 = vmatpush3.bf16.msra.mxu1 %v3493_v24 }
 0x260   :  { %2671 = vmatprep.subr.bf16.mxu0 %v3435_v4  ;;  %2696 = vmatprep.subr.bf16.mxu1 %v3070_v40 }
 0x263   :  { %2673 = vmatpush1.bf16.msra.mxu0 %v3461_v13  ;;  %2698 = vmatpush3.bf16.msra.mxu1 %v3506_v29 }
 0x264   :  { %2675 = vmatprep.subr.bf16.mxu0 %v3467_v15  ;;  %2699 = vmatprep.subr.bf16.mxu1 %v3070_v40 }
 0x267   :  { %2677 = vmatpush1.bf16.msra.mxu0 %v3489_v23  ;;  %2701 = vmatpush3.bf16.msra.mxu1 %v3520_v32 }
 0x268   :  { %2703 = vmatprep.subr.bf16.mxu0 %v3263_v9  ;;  %2734 = vmatprep.subr.bf16.mxu1 %v3070_v40 }
 0x31d   :  { %v806_v43 = vpop.f32.mrb[4].mxu0  ;;  %v877_v42 = vpop.f32.mrb[12].mxu1 }
 0x31e   :  { %v2954_v47 = vadd.f32 %v806_v43, %v3575_v2  ;;  %v808_v49 = vpop.f32.mrb[5].mxu0  ;;  %v2203_v52 = vpop.f32.mrb[13].mxu1  ;;  %v895_v5 = vadd.f32 %v3584_v28, %v877_v42 }
 0x31f   :  { %v2955_v58 = vadd.f32 %v808_v49, %v3577_v6 }
 0x320   :  { %v1864_v54 = vmul.f32 -1.442695, %v2954_v47 }
 0x321   :  { %v1865_v39 = vmul.f32 -1.442695, %v2955_v58 }
 0x322   :  { %3005 = vpow2.f32 %v1864_v54 }
 0x323   :  { %3007 = vpow2.f32 %v1865_v39 }
 0x32c   :  { %v3006_v44 = vpop.eup %3005 }
 0x32d   :  { %v885_v60 = vadd.f32 1.0, %v3006_v44  ;;  %v3008_v63 = vpop.eup %3007 }
 0x32e   :  { %v892_v0 = vadd.f32 1.0, %v3008_v63 }
 0x32f   :  { %3009 = vrcp.f32 %v885_v60 }
 0x330   :  { %3011 = vrcp.f32 %v892_v0 }
 0x339   :  { %v3010_v7 = vpop.eup %3009 }
 0x33a   :  { %v896_v8 = vmul.f32 %v3010_v7, %v895_v5  ;;  %v3012_v12 = vpop.eup %3011 }
 0x33b   :  { %v899_v14 = vsub.f32 1.0, %v3012_v12  ;;  %v901_v21 = vmul.f32 %v3012_v12, %v733_v38 }
 0x33c   :  { %v897_v11 = vadd.f32 %v896_v8, %v3565_v50 }
 0x33e   :  { %3013 = vtanh.f32 %v897_v11 }
 0x348   :  { %v3014_v16 = vpop.eup %3013 }
 0x349   :  { %v900_v19 = vmul.f32 %v3014_v16, %v899_v14 }
 0x34b   :  { %v902_v22 = vadd.f32 %v901_v21, %v900_v19 }
 0x34d   :  { %974 = vmatmul.mubr.f32.vlgmr.msra.gmra.mrb[6].mxu0 %v902_v22  ;;  %2237 = vmatmul.mubr.f32.vlgmr.msra.gmra.mrb[14].mxu1 %v902_v22 }
 0x34e   :  { %2705 = vmatpush1.bf16.msra.mxu0 %v3283_v17  ;;  %2736 = vmatpush3.bf16.msra.mxu1 %v3352_v41 }
 0x34f   :  { %2707 = vmatprep.subr.bf16.mxu0 %v3286_v18  ;;  %2737 = vmatprep.subr.bf16.mxu1 %v3070_v40 }
 0x350   :  { %1142 = vmatprep.mubr.f32.mxu0 %v3069_v3  ;;  %2271 = vmatprep.mubr.msk.f32.mxu1 %vm3071_vm0, %v3069_v3 }
 0x352   :  { %2709 = vmatpush1.bf16.msra.mxu0 %v3306_v25  ;;  %2739 = vmatpush3.bf16.msra.mxu1 %v3383_v51 }
 0x353   :  { %2711 = vmatprep.subr.bf16.mxu0 %v3309_v26  ;;  %2740 = vmatprep.subr.bf16.mxu1 %v3070_v40 }
 0x356   :  { %2713 = vmatpush1.bf16.msra.mxu0 %v3334_v34  ;;  %2742 = vmatpush3.bf16.msra.mxu1 %v3415_v61 }
 0x357   :  { %2715 = vmatprep.subr.bf16.mxu0 %v3337_v35  ;;  %2743 = vmatprep.subr.bf16.mxu1 %v3070_v40 }
 0x35a   :  { %2717 = vmatpush1.bf16.msra.mxu0 %v3365_v45  ;;  %2745 = vmatpush3.bf16.msra.mxu1 %v3450_v10 }
 0x35b   :  { %2719 = vmatprep.subr.bf16.mxu0 %v3368_v46  ;;  %2746 = vmatprep.subr.bf16.mxu1 %v3070_v40 }
 0x35e   :  { %2721 = vmatpush1.bf16.msra.mxu0 %v3397_v55  ;;  %2748 = vmatpush3.bf16.msra.mxu1 %v3476_v20 }
 0x35f   :  { %2723 = vmatprep.subr.bf16.mxu0 %v3400_v56  ;;  %2749 = vmatprep.subr.bf16.mxu1 %v3070_v40 }
 0x362   :  { %2725 = vmatpush1.bf16.msra.mxu0 %v3429_v1  ;;  %2751 = vmatpush3.bf16.msra.mxu1 %v3493_v24 }
 0x363   :  { %2727 = vmatprep.subr.bf16.mxu0 %v3435_v4  ;;  %2752 = vmatprep.subr.bf16.mxu1 %v3070_v40 }
 0x366   :  { %2729 = vmatpush1.bf16.msra.mxu0 %v3461_v13  ;;  %2754 = vmatpush3.bf16.msra.mxu1 %v3506_v29 }
 0x367   :  { %2731 = vmatprep.subr.bf16.mxu0 %v3467_v15  ;;  %2755 = vmatprep.subr.bf16.mxu1 %v3070_v40 }
 0x36a   :  { %2733 = vmatpush1.bf16.msra.mxu0 %v3489_v23  ;;  %2757 = vmatpush3.bf16.msra.mxu1 %v3520_v32 }
 0x36b   :  { %2759 = vmatprep.subr.bf16.mxu0 %v3263_v9  ;;  %2790 = vmatprep.subr.bf16.mxu1 %v3070_v40 }
 0x420   :  { %v975_v50 = vpop.f32.mrb[6].mxu0  ;;  %v1046_v27 = vpop.f32.mrb[14].mxu1 }
 0x421   :  { %v2956_v30 = vadd.f32 %v975_v50, %v3575_v2  ;;  %v977_v31 = vpop.f32.mrb[7].mxu0  ;;  %v2238_v33 = vpop.f32.mrb[15].mxu1  ;;  %v1064_v52 = vadd.f32 %v3584_v28, %v1046_v27 }
 0x422   :  { %v2957_v37 = vadd.f32 %v977_v31, %v3577_v6 }
 0x423   :  { %v1866_v36 = vmul.f32 -1.442695, %v2956_v30 }
 0x424   :  { %v1867_v38 = vmul.f32 -1.442695, %v2957_v37 }
 0x425   :  { %3015 = vpow2.f32 %v1866_v36 }
 0x426   :  { %3017 = vpow2.f32 %v1867_v38 }
 0x42f   :  { %v3016_v43 = vpop.eup %3015 }
 0x430   :  { %v1054_v42 = vadd.f32 1.0, %v3016_v43  ;;  %v3018_v47 = vpop.eup %3017 }
 0x431   :  { %v1061_v49 = vadd.f32 1.0, %v3018_v47 }
 0x432   :  { %3019 = vrcp.f32 %v1054_v42 }
 0x433   :  { %3021 = vrcp.f32 %v1061_v49 }
 0x43c   :  { %v3020_v54 = vpop.eup %3019 }
 0x43d   :  { %v1065_v58 = vmul.f32 %v3020_v54, %v1064_v52  ;;  %v3022_v44 = vpop.eup %3021 }
 0x43e   :  { %v1068_v60 = vsub.f32 1.0, %v3022_v44  ;;  %v1070_v5 = vmul.f32 %v3022_v44, %v902_v22 }
 0x43f   :  { %v1066_v39 = vadd.f32 %v1065_v58, %v3563_v48 }
 0x441   :  { %3023 = vtanh.f32 %v1066_v39 }
 0x44b   :  { %v3024_v63 = vpop.eup %3023 }
 0x44c   :  { %v1069_v0 = vmul.f32 %v3024_v63, %v1068_v60 }
 0x44e   :  { %v1071_v7 = vadd.f32 %v1070_v5, %v1069_v0 }
 0x450   :  { %1143 = vmatmul.mubr.f32.vlgmr.msra.gmra.mrb[8].mxu0 %v1071_v7  ;;  %2272 = vmatmul.mubr.f32.vlgmr.msra.gmra.mrb[16].mxu1 %v1071_v7 }
 0x451   :  { %2761 = vmatpush1.bf16.msra.mxu0 %v3283_v17  ;;  %2792 = vmatpush3.bf16.msra.mxu1 %v3352_v41 }
 0x452   :  { %2763 = vmatprep.subr.bf16.mxu0 %v3286_v18  ;;  %2793 = vmatprep.subr.bf16.mxu1 %v3070_v40 }
 0x453   :  { %1311 = vmatprep.mubr.f32.mxu0 %v3069_v3  ;;  %2306 = vmatprep.mubr.msk.f32.mxu1 %vm3071_vm0, %v3069_v3 }
 0x455   :  { %2765 = vmatpush1.bf16.msra.mxu0 %v3306_v25  ;;  %2795 = vmatpush3.bf16.msra.mxu1 %v3383_v51 }
 0x456   :  { %2767 = vmatprep.subr.bf16.mxu0 %v3309_v26  ;;  %2796 = vmatprep.subr.bf16.mxu1 %v3070_v40 }
 0x459   :  { %2769 = vmatpush1.bf16.msra.mxu0 %v3334_v34  ;;  %2798 = vmatpush3.bf16.msra.mxu1 %v3415_v61 }
 0x45a   :  { %2771 = vmatprep.subr.bf16.mxu0 %v3337_v35  ;;  %2799 = vmatprep.subr.bf16.mxu1 %v3070_v40 }
 0x45d   :  { %2773 = vmatpush1.bf16.msra.mxu0 %v3365_v45  ;;  %2801 = vmatpush3.bf16.msra.mxu1 %v3450_v10 }
 0x45e   :  { %2775 = vmatprep.subr.bf16.mxu0 %v3368_v46  ;;  %2802 = vmatprep.subr.bf16.mxu1 %v3070_v40 }
 0x461   :  { %2777 = vmatpush1.bf16.msra.mxu0 %v3397_v55  ;;  %2804 = vmatpush3.bf16.msra.mxu1 %v3476_v20 }
 0x462   :  { %2779 = vmatprep.subr.bf16.mxu0 %v3400_v56  ;;  %2805 = vmatprep.subr.bf16.mxu1 %v3070_v40 }
 0x465   :  { %2781 = vmatpush1.bf16.msra.mxu0 %v3429_v1  ;;  %2807 = vmatpush3.bf16.msra.mxu1 %v3493_v24 }
 0x466   :  { %2783 = vmatprep.subr.bf16.mxu0 %v3435_v4  ;;  %2808 = vmatprep.subr.bf16.mxu1 %v3070_v40 }
 0x469   :  { %2785 = vmatpush1.bf16.msra.mxu0 %v3461_v13  ;;  %2810 = vmatpush3.bf16.msra.mxu1 %v3506_v29 }
 0x46a   :  { %2787 = vmatprep.subr.bf16.mxu0 %v3467_v15  ;;  %2811 = vmatprep.subr.bf16.mxu1 %v3070_v40 }
 0x46d   :  { %2789 = vmatpush1.bf16.msra.mxu0 %v3489_v23  ;;  %2813 = vmatpush3.bf16.msra.mxu1 %v3520_v32 }
 0x46e   :  { %2815 = vmatprep.subr.bf16.mxu0 %v3263_v9  ;;  %2846 = vmatprep.subr.bf16.mxu1 %v3070_v40 }
 0x523   :  { %v1144_v48 = vpop.f32.mrb[8].mxu0  ;;  %v1215_v8 = vpop.f32.mrb[16].mxu1 }
 0x524   :  { %v2958_v11 = vadd.f32 %v1144_v48, %v3575_v2  ;;  %v1146_v12 = vpop.f32.mrb[9].mxu0  ;;  %v2273_v14 = vpop.f32.mrb[17].mxu1  ;;  %v1233_v31 = vadd.f32 %v3584_v28, %v1215_v8 }
 0x525   :  { %v2959_v19 = vadd.f32 %v1146_v12, %v3577_v6 }
 0x526   :  { %v1868_v16 = vmul.f32 -1.442695, %v2958_v11 }
 0x527   :  { %v1869_v21 = vmul.f32 -1.442695, %v2959_v19 }
 0x528   :  { %3025 = vpow2.f32 %v1868_v16 }
 0x529   :  { %3027 = vpow2.f32 %v1869_v21 }
 0x532   :  { %v3026_v22 = vpop.eup %3025 }
 0x533   :  { %v1223_v50 = vadd.f32 1.0, %v3026_v22  ;;  %v3028_v27 = vpop.eup %3027 }
 0x534   :  { %v1230_v30 = vadd.f32 1.0, %v3028_v27 }
 0x535   :  { %3029 = vrcp.f32 %v1223_v50 }
 0x536   :  { %3031 = vrcp.f32 %v1230_v30  ;;  %v1750_v30 = vld [vmem:[%s3897_s5 + $0x10] sm:$0xff] }
 0x53f   :  { %v3030_v33 = vpop.eup %3029 }
 0x540   :  { %v1234_v36 = vmul.f32 %v3030_v33, %v1233_v31  ;;  %v3032_v38 = vpop.eup %3031  ;;  %v1752_v33 = vld [vmem:[%s3897_s5 + $0x20] sm:$0xff] }
 0x541   :  { %v1237_v43 = vsub.f32 1.0, %v3032_v38  ;;  %v1239_v49 = vmul.f32 %v3032_v38, %v1071_v7  ;;  %v1754_v38 = vld [vmem:[%s3897_s5 + $0x30] sm:$0xff] }
 0x542   :  { %v1235_v37 = vadd.f32 %v1234_v36, %v3569_v57  ;;  %v1753_v36 = vld [vmem:[%s3897_s5 + $0x28] sm:$0xff] }
 0x544   :  { %3033 = vtanh.f32 %v1235_v37  ;;  %v2933_v37 = vpack.c.bf16 %v1753_v36, %v1752_v33 }
 0x54e   :  { %v3034_v42 = vpop.eup %3033 }
 0x54f   :  { %v1238_v47 = vmul.f32 %v3034_v42, %v1237_v43  ;;  %v1755_v43 = vld [vmem:[%s3897_s5 + $0x38] sm:$0xff] }
 0x550   :  { %v2936_v42 = vpack.c.bf16 %v1755_v43, %v1754_v38 }
 0x551   :  { %v1240_v52 = vadd.f32 %v1239_v49, %v1238_v47  ;;  %v1756_v47 = vld [vmem:[%s3897_s5 + $0x40] sm:$0xff]  ;;  %v1757_v49 = vld [vmem:[%s3897_s5 + $0x48] sm:$0xff] }
 0x553   :  { %1312 = vmatmul.mubr.f32.vlgmr.msra.gmra.mrb[10].mxu0 %v1240_v52  ;;  %2307 = vmatmul.mubr.f32.vlgmr.msra.gmra.mrb[18].mxu1 %v1240_v52 }
 0x554   :  { %2817 = vmatpush1.bf16.msra.mxu0 %v3283_v17  ;;  %2848 = vmatpush3.bf16.msra.mxu1 %v3352_v41 }
 0x555   :  { %2819 = vmatprep.subr.bf16.mxu0 %v3286_v18  ;;  %2849 = vmatprep.subr.bf16.mxu1 %v3070_v40 }
 0x556   :  { %1480 = vmatprep.mubr.f32.mxu0 %v3069_v3  ;;  %2341 = vmatprep.mubr.msk.f32.mxu1 %vm3071_vm0, %v3069_v3 }
 0x558   :  { %2821 = vmatpush1.bf16.msra.mxu0 %v3306_v25  ;;  %2851 = vmatpush3.bf16.msra.mxu1 %v3383_v51 }
 0x559   :  { %2823 = vmatprep.subr.bf16.mxu0 %v3309_v26  ;;  %2852 = vmatprep.subr.bf16.mxu1 %v3070_v40 }
 0x55c   :  { %2825 = vmatpush1.bf16.msra.mxu0 %v3334_v34  ;;  %2854 = vmatpush3.bf16.msra.mxu1 %v3415_v61 }
 0x55d   :  { %2827 = vmatprep.subr.bf16.mxu0 %v3337_v35  ;;  %2855 = vmatprep.subr.bf16.mxu1 %v3070_v40 }
 0x560   :  { %2829 = vmatpush1.bf16.msra.mxu0 %v3365_v45  ;;  %2857 = vmatpush3.bf16.msra.mxu1 %v3450_v10 }
 0x561   :  { %2831 = vmatprep.subr.bf16.mxu0 %v3368_v46  ;;  %2858 = vmatprep.subr.bf16.mxu1 %v3070_v40 }
 0x564   :  { %2833 = vmatpush1.bf16.msra.mxu0 %v3397_v55  ;;  %2860 = vmatpush3.bf16.msra.mxu1 %v3476_v20 }
 0x565   :  { %2835 = vmatprep.subr.bf16.mxu0 %v3400_v56  ;;  %2861 = vmatprep.subr.bf16.mxu1 %v3070_v40 }
 0x568   :  { %2837 = vmatpush1.bf16.msra.mxu0 %v3429_v1  ;;  %2863 = vmatpush3.bf16.msra.mxu1 %v3493_v24 }
 0x569   :  { %2839 = vmatprep.subr.bf16.mxu0 %v3435_v4  ;;  %2864 = vmatprep.subr.bf16.mxu1 %v3070_v40 }
 0x56c   :  { %2841 = vmatpush1.bf16.msra.mxu0 %v3461_v13  ;;  %2866 = vmatpush3.bf16.msra.mxu1 %v3506_v29 }
 0x56d   :  { %2843 = vmatprep.subr.bf16.mxu0 %v3467_v15  ;;  %2867 = vmatprep.subr.bf16.mxu1 %v3070_v40 }
 0x570   :  { %2845 = vmatpush1.bf16.msra.mxu0 %v3489_v23  ;;  %2869 = vmatpush3.bf16.msra.mxu1 %v3520_v32 }
 0x571   :  { %2871 = vmatprep.subr.bf16.mxu0 %v3263_v9  ;;  %2902 = vmatprep.subr.bf16.mxu1 %v3070_v40 }
 0x626   :  { %v1313_v57 = vpop.f32.mrb[10].mxu0  ;;  %v1384_v54 = vpop.f32.mrb[18].mxu1 }
 0x627   :  { %v2960_v58 = vadd.f32 %v1313_v57, %v3575_v2  ;;  %v1315_v39 = vpop.f32.mrb[11].mxu0  ;;  %v2308_v44 = vpop.f32.mrb[19].mxu1  ;;  %v1402_v9 = vadd.f32 %v3584_v28, %v1384_v54  ;;  %v1758_v57 = vld [vmem:[%s3897_s5 + $0x50] sm:$0xff]  ;;  %v1759_v54 = vld [vmem:[%s3897_s5 + $0x58] sm:$0xff] }
 0x628   :  { %v2961_v63 = vadd.f32 %v1315_v39, %v3577_v6  ;;  %v1760_v39 = vld [vmem:[%s3897_s5 + $0x60] sm:$0xff]  ;;  %v1761_v44 = vld [vmem:[%s3897_s5 + $0x68] sm:$0xff] }
 0x629   :  { %v1870_v60 = vmul.f32 -1.442695, %v2960_v58  ;;  %v2942_v58 = vpack.c.bf16 %v1759_v54, %v1758_v57 }
 0x62a   :  { %v1871_v0 = vmul.f32 -1.442695, %v2961_v63  ;;  %v1762_v63 = vld [vmem:[%s3897_s5 + $0x70] sm:$0xff] }
 0x62b   :  { %3035 = vpow2.f32 %v1870_v60  ;;  %v2945_v60 = vpack.c.bf16 %v1761_v44, %v1760_v39 }
 0x62c   :  { %3037 = vpow2.f32 %v1871_v0  ;;  %v1763_v0 = vld [vmem:[%s3897_s5 + $0x78] sm:$0xff] }
 0x635   :  { %v3036_v5 = vpop.eup %3035 }
 0x636   :  { %v1392_v7 = vadd.f32 1.0, %v3036_v5  ;;  %v3038_v48 = vpop.eup %3037  ;;  %v2948_v5 = vpack.c.bf16 %v1763_v0, %v1762_v63 }
 0x637   :  { %v1399_v8 = vadd.f32 1.0, %v3038_v48 }
 0x638   :  { %3039 = vrcp.f32 %v1392_v7 }
 0x639   :  { %3041 = vrcp.f32 %v1399_v8 }
 0x642   :  { %v3040_v11 = vpop.eup %3039 }
 0x643   :  { %v1403_v12 = vmul.f32 %v3040_v11, %v1402_v9  ;;  %v3042_v16 = vpop.eup %3041 }
 0x644   :  { %v1406_v19 = vsub.f32 1.0, %v3042_v16  ;;  %v1408_v50 = vmul.f32 %v3042_v16, %v1240_v52  ;;  %v2939_v52 = vpack.c.bf16 %v1757_v49, %v1756_v47 }
 0x645   :  { %v1404_v14 = vadd.f32 %v1403_v12, %v3567_v53  ;;  %v1749_v53 = vld [vmem:[%s3897_s5 + $0x8] sm:$0xff] }
 0x647   :  { %3043 = vtanh.f32 %v1404_v14 }
 0x651   :  { %v3044_v21 = vpop.eup %3043 }
 0x652   :  { %v1407_v22 = vmul.f32 %v3044_v21, %v1406_v19 }
 0x654   :  { %v1409_v27 = vadd.f32 %v1408_v50, %v1407_v22 }
 0x656   :  { %1481 = vmatmul.mubr.f32.vlgmr.msra.gmra.mrb[12].mxu0 %v1409_v27  ;;  %2342 = vmatmul.mubr.f32.vlgmr.msra.gmra.mrb[20].mxu1 %v1409_v27 }
 0x657   :  { %2873 = vmatpush1.bf16.msra.mxu0 %v3283_v17  ;;  %2904 = vmatpush3.bf16.msra.mxu1 %v3352_v41 }
 0x658   :  { %2875 = vmatprep.subr.bf16.mxu0 %v3286_v18  ;;  %2905 = vmatprep.subr.bf16.mxu1 %v3070_v40 }
 0x659   :  { %1649 = vmatprep.mubr.f32.mxu0 %v3069_v3  ;;  %2376 = vmatprep.mubr.msk.f32.mxu1 %vm3071_vm0, %v3069_v3 }
 0x65b   :  { %2877 = vmatpush1.bf16.msra.mxu0 %v3306_v25  ;;  %2907 = vmatpush3.bf16.msra.mxu1 %v3383_v51 }
 0x65c   :  { %2879 = vmatprep.subr.bf16.mxu0 %v3309_v26  ;;  %2908 = vmatprep.subr.bf16.mxu1 %v3070_v40 }
 0x65f   :  { %2881 = vmatpush1.bf16.msra.mxu0 %v3334_v34  ;;  %2910 = vmatpush3.bf16.msra.mxu1 %v3415_v61 }
 0x660   :  { %2883 = vmatprep.subr.bf16.mxu0 %v3337_v35  ;;  %2911 = vmatprep.subr.bf16.mxu1 %v3070_v40 }
 0x663   :  { %2885 = vmatpush1.bf16.msra.mxu0 %v3365_v45  ;;  %2913 = vmatpush3.bf16.msra.mxu1 %v3450_v10 }
 0x664   :  { %2887 = vmatprep.subr.bf16.mxu0 %v3368_v46  ;;  %2914 = vmatprep.subr.bf16.mxu1 %v3070_v40 }
 0x667   :  { %2889 = vmatpush1.bf16.msra.mxu0 %v3397_v55  ;;  %2916 = vmatpush3.bf16.msra.mxu1 %v3476_v20 }
 0x668   :  { %2891 = vmatprep.subr.bf16.mxu0 %v3400_v56  ;;  %2917 = vmatprep.subr.bf16.mxu1 %v3070_v40 }
 0x66b   :  { %2893 = vmatpush1.bf16.msra.mxu0 %v3429_v1  ;;  %2919 = vmatpush3.bf16.msra.mxu1 %v3493_v24 }
 0x66c   :  { %2895 = vmatprep.subr.bf16.mxu0 %v3435_v4  ;;  %2920 = vmatprep.subr.bf16.mxu1 %v3070_v40 }
 0x66f   :  { %2897 = vmatpush1.bf16.msra.mxu0 %v3461_v13  ;;  %2922 = vmatpush3.bf16.msra.mxu1 %v3506_v29 }
 0x670   :  { %2899 = vmatprep.subr.bf16.mxu0 %v3467_v15  ;;  %2923 = vmatprep.subr.bf16.mxu1 %v3070_v40 }
 0x673   :  { %2901 = vmatpush1.bf16.msra.mxu0 %v3489_v23  ;;  %2925 = vmatpush3.bf16.msra.mxu1 %v3520_v32  ;;  %v1748_v32 = vld [vmem:[%s3897_s5] sm:$0xff] }
 0x674   :  { %2926 = vmatprep.subr.bf16.mxu0 %v3070_v40 }
 0x729   :  { %v1482_v17 = vpop.f32.mrb[12].mxu0  ;;  %v1553_v18 = vpop.f32.mrb[20].mxu1 }
 0x72a   :  { %v2962_v25 = vadd.f32 %v1482_v17, %v3575_v2  ;;  %v1484_v26 = vpop.f32.mrb[13].mxu0  ;;  %v2343_v34 = vpop.f32.mrb[21].mxu1  ;;  %v1571_v61 = vadd.f32 %v3584_v28, %v1553_v18 }
 0x72b   :  { %v2963_v41 = vadd.f32 %v1484_v26, %v3577_v6 }
 0x72c   :  { %v1872_v35 = vmul.f32 -1.442695, %v2962_v25 }
 0x72d   :  { %v1873_v45 = vmul.f32 -1.442695, %v2963_v41  ;;  %v1876_v41 = vld [vmem:[%s3898_s6] ss:$0 sm:$0xff] }
 0x72e   :  { %3045 = vpow2.f32 %v1872_v35 }
 0x72f   :  { %3047 = vpow2.f32 %v1873_v45 }
 0x738   :  { %v3046_v46 = vpop.eup %3045 }
 0x739   :  { %v1561_v51 = vadd.f32 1.0, %v3046_v46  ;;  %v3048_v55 = vpop.eup %3047 }
 0x73a   :  { %v1568_v56 = vadd.f32 1.0, %v3048_v55 }
 0x73b   :  { %3049 = vrcp.f32 %v1561_v51 }
 0x73c   :  { %3051 = vrcp.f32 %v1568_v56 }
 0x745   :  { %v3050_v1 = vpop.eup %3049 }
 0x746   :  { %v1572_v4 = vmul.f32 %v3050_v1, %v1571_v61  ;;  %v3052_v13 = vpop.eup %3051 }
 0x747   :  { %v1575_v15 = vsub.f32 1.0, %v3052_v13  ;;  %v1577_v24 = vmul.f32 %v3052_v13, %v1409_v27 }
 0x748   :  { %v1573_v10 = vadd.f32 %v1572_v4, %v3573_v62  ;;  %v2927_v62 = vpack.c.bf16 %v1749_v53, %v1748_v32 }
 0x74a   :  { %3053 = vtanh.f32 %v1573_v10 }
 0x754   :  { %v3054_v20 = vpop.eup %3053 }
 0x755   :  { %v1576_v23 = vmul.f32 %v3054_v20, %v1575_v15 }
 0x757   :  { %v3820_v29 = vadd.f32 %v1577_v24, %v1576_v23 }
 0x759   :  { %1650 = vmatmul.mubr.f32.vlgmr.msra.gmra.mrb[14].mxu0 %v3820_v29  ;;  %2377 = vmatmul.mubr.f32.vlgmr.msra.gmra.mrb[22].mxu1 %v3820_v29 }
 0x75a   :  { %2411 = vmatprep.mubr.msk.f32.mxu0 %vm3071_vm0, %v3069_v3  ;;  %2928 = vmatpush3.bf16.msra.mxu0 %v2927_v62  ;;  %v1751_v3 = vld [vmem:[%s3897_s5 + $0x18] sm:$0xff] }
 0x75b   :  { %2929 = vmatprep.subr.bf16.mxu0 %v3070_v40  ;;  %v2930_v31 = vpack.c.bf16 %v1751_v3, %v1750_v30 }
 0x75e   :  { %2931 = vmatpush3.bf16.msra.mxu0 %v2930_v31 }
 0x75f   :  { %2932 = vmatprep.subr.bf16.mxu0 %v3070_v40 }
 0x762   :  { %2934 = vmatpush3.bf16.msra.mxu0 %v2933_v37 }
 0x763   :  { %2935 = vmatprep.subr.bf16.mxu0 %v3070_v40 }
 0x766   :  { %2937 = vmatpush3.bf16.msra.mxu0 %v2936_v42 }
 0x767   :  { %2938 = vmatprep.subr.bf16.mxu0 %v3070_v40 }
 0x76a   :  { %2940 = vmatpush3.bf16.msra.mxu0 %v2939_v52 }
 0x76b   :  { %2941 = vmatprep.subr.bf16.mxu0 %v3070_v40 }
 0x76e   :  { %2943 = vmatpush3.bf16.msra.mxu0 %v2942_v58 }
 0x76f   :  { %2944 = vmatprep.subr.bf16.mxu0 %v3070_v40 }
 0x772   :  { %2946 = vmatpush3.bf16.msra.mxu0 %v2945_v60 }
 0x773   :  { %2947 = vmatprep.subr.bf16.mxu0 %v3070_v40 }
 0x776   :  { %2949 = vmatpush3.bf16.msra.mxu0 %v2948_v5 }
 0x82c   :  { %v1651_v7 = vpop.f32.mrb[14].mxu0  ;;  %v1722_v48 = vpop.f32.mrb[22].mxu1 }
 0x82d   :  { %v2964_v8 = vadd.f32 %v1651_v7, %v3575_v2  ;;  %v1653_v9 = vpop.f32.mrb[15].mxu0  ;;  %v2378_v11 = vpop.f32.mrb[23].mxu1  ;;  %v1740_v40 = vadd.f32 %v3584_v28, %v1722_v48 }
 0x82e   :  { %v2965_v14 = vadd.f32 %v1653_v9, %v3577_v6 }
 0x82f   :  { %v1874_v12 = vmul.f32 -1.442695, %v2964_v8 }
 0x830   :  { %v1875_v16 = vmul.f32 -1.442695, %v2965_v14 }
 0x831   :  { %3055 = vpow2.f32 %v1874_v12 }
 0x832   :  { %3057 = vpow2.f32 %v1875_v16 }
 0x83b   :  { %v3056_v19 = vpop.eup %3055 }
 0x83c   :  { %v1730_v21 = vadd.f32 1.0, %v3056_v19  ;;  %v3058_v22 = vpop.eup %3057 }
 0x83d   :  { %v1737_v50 = vadd.f32 1.0, %v3058_v22 }
 0x83e   :  { %3059 = vrcp.f32 %v1730_v21 }
 0x83f   :  { %3061 = vrcp.f32 %v1737_v50 }
 0x848   :  { %v3060_v27 = vpop.eup %3059 }
 0x849   :  { %v1741_v17 = vmul.f32 %v3060_v27, %v1740_v40  ;;  %v3062_v18 = vpop.eup %3061 }
 0x84a   :  { %v1744_v25 = vsub.f32 1.0, %v3062_v18  ;;  %v1746_v34 = vmul.f32 %v3062_v18, %v3820_v29 }
 0x84b   :  { %v1742_v2 = vadd.f32 %v1741_v17, %v3571_v59 }
 0x84d   :  { %3063 = vtanh.f32 %v1742_v2 }
 0x857   :  { %v3064_v26 = vpop.eup %3063 }
 0x858   :  { %v1745_v6 = vmul.f32 %v3064_v26, %v1744_v25 }
 0x85a   :  { %v1747_v35 = vadd.f32 %v1746_v34, %v1745_v6 }
 0x85c   :  { %2412 = vmatmul.mubr.f32.vlgmr.msra.gmra.mrb[16].mxu0 %v1747_v35 }
 0x92f   :  { %v1837_v45 = vpop.f32.mrb[16].mxu0 }
 0x930   :  { %v1838_v28 = vadd.f32 %v1876_v41, %v1837_v45  ;;  %v2413_v46 = vpop.f32.mrb[17].mxu0 }
 0x932   :  { %v1877_v51 = vmul.f32 -1.442695, %v1838_v28 }
 0x934   :  { %3065 = vpow2.f32 %v1877_v51 }
 0x93e   :  { %v3066_v55 = vpop.eup %3065 }
 0x93f   :  { %v1844_v59 = vadd.f32 1.0, %v3066_v55 }
 0x941   :  { %3067 = vrcp.f32 %v1844_v59 }
 0x94b   :  { %v3068_v56 = vpop.eup %3067 }
 0x94c   :  { %1847 = vst [vmem:[%s3899_s7] sm:$0xff] %v3068_v56 }

</bundles_post_ra>
